<compile_context>
chip_gen: v6e
topology: v6e:2x2x1
jax: 0.10.0
libtpu: 0.0.40
codegen_flags: <defaults>
</compile_context>

<pallas_src>
import math

import jax
import jax.numpy as jnp
import numpy as np
from jax.experimental import pallas as pl
from jax.experimental.pallas import tpu as pltpu


# ----------------------------------------------------------------------------
# Fused Pallas kernel: all LSTM layers + final Linear (wavefront recurrence)
# ----------------------------------------------------------------------------
def make_fused_kernel(n_layers, T, B, H):
    """Builds the fused kernel.

    Ref layout (all full-array blocks resident in VMEM, no grid, no scratch):
      refs[0]                : x        (T*B, F)  time-major, flattened, bf16
      refs[1 : 1+3L]         : per layer (wihT (D,4H) bf16, whhT (H,4H) bf16,
                                          fused bias (1,4H) f32) -- i/f/o
                               columns pre-scaled by 0.5 (half-tanh trick)
      refs[1+3L], refs[2+3L] : lin_w (H,1) f32, lin_b (1,1) f32
      refs[3+3L]             : out      (B, 1) f32
    """
    L = n_layers
    assert L >= 1
    f32 = jnp.float32
    bf16 = jnp.bfloat16

    def kernel(*refs):
        x_ref = refs[0]
        layer_refs = refs[1:1 + 3 * L]
        lin_w_ref = refs[1 + 3 * L]
        lin_b_ref = refs[2 + 3 * L]
        out_ref = refs[3 + 3 * L]

        # Load all weights once (values stay resident in vregs/VMEM).
        wih = [layer_refs[3 * l + 0][...] for l in range(L)]   # (D_in,4H) bf16
        whh = [layer_refs[3 * l + 1][...] for l in range(L)]   # (H,   4H) bf16
        bias = [layer_refs[3 * l + 2][...] for l in range(L)]  # (1,   4H) f32

        # Hoisted layer-0 input projection for ALL timesteps, bias folded in.
        # One (T*B,F)x(F,4H) MXU matmul, off the sequential critical path.
        xg0 = jnp.dot(x_ref[...], wih[0],
                      preferred_element_type=f32) + bias[0]     # (T*B,4H) f32

        # Per-layer recurrent state (traced values, not refs).
        h = [jnp.zeros((B, H), f32) for _ in range(L)]    # f32 hidden state
        hb = [jnp.zeros((B, H), bf16) for _ in range(L)]  # bf16 copy for MXU
        c = [jnp.zeros((B, H), f32) for _ in range(L)]

        def cell(gates, c_prev):
            # i/f/o columns were pre-scaled by 0.5: sigmoid(x) = 0.5*(1+tanh(x/2)).
            th = jnp.tanh(gates)                           # single EUP pass
            i_g = 0.5 * (th[:, 0 * H:1 * H] + 1.0)
            f_g = 0.5 * (th[:, 1 * H:2 * H] + 1.0)
            g_g = th[:, 2 * H:3 * H]
            o_g = 0.5 * (th[:, 3 * H:4 * H] + 1.0)
            c_new = f_g * c_prev + i_g * g_g
            h_new = o_g * jnp.tanh(c_new)
            return h_new, c_new

        # Anti-diagonal wavefront over (layer, time).  Every cell in diagonal s
        # reads only values produced in diagonal s-1, so cells are independent
        # within a diagonal and the dependent chain has length L+T-1.
        for s in range(L + T - 1):
            h_prev = list(h)          # snapshot of previous diagonal's states
            hb_prev = list(hb)
            for l in range(L):
                t = s - l
                if not (0 <= t < T):
                    continue
                rec = jnp.dot(hb_prev[l], whh[l], preferred_element_type=f32)
                if l == 0:
                    gates = xg0[t * B:(t + 1) * B, :] + rec
                else:
                    # Input = hidden of layer l-1 at time t (previous diagonal).
                    gates = (jnp.dot(hb_prev[l - 1], wih[l],
                                     preferred_element_type=f32)
                             + rec + bias[l])
                h_new, c_new = cell(gates, c[l])
                h[l] = h_new
                hb[l] = h_new.astype(bf16)
                c[l] = c_new

        # Final Linear on the top layer's last-timestep hidden state (f32).
        out_ref[...] = (jnp.dot(h[L - 1], lin_w_ref[...],
                                preferred_element_type=f32)
                        + lin_b_ref[...]).astype(out_ref.dtype)

    return kernel


# ----------------------------------------------------------------------------
# Wrapper
# ----------------------------------------------------------------------------
@jax.jit
def lstm_forward(x_btf, layer_params, linear_params):
    """Equivalent of LSTM.forward(x) with x: (B, T, F) batch_first.

    Returns (B, 1): Linear applied to the last timestep of the top layer.
    Dropout (p=0.1 between layers) is inactive at inference -> identity.
    """
    B, T, F = x_btf.shape
    H = layer_params[0][1].shape[0]
    L = len(layer_params)
    assert L >= 1

    # Time-major, flattened to (T*B, F); bf16 operands for the MXU.
    x_flat = (jnp.transpose(x_btf, (1, 0, 2))
              .reshape(T * B, F).astype(jnp.bfloat16))

    # Half-tanh trick: scale i/f/o gate columns (PyTorch order i,f,g,o) by 0.5
    # so one tanh per cell recovers both sigmoid and tanh gates.  Cast matmul
    # operands to bf16; keep the fused bias in f32.
    scale_np = np.ones((1, 4 * H), np.float32)
    scale_np[:, 0:2 * H] = 0.5
    scale_np[:, 3 * H:4 * H] = 0.5
    scale = jnp.asarray(scale_np)

    flat_params = []
    for (wihT, whhT, b) in layer_params:
        flat_params += [
            (wihT.astype(jnp.float32) * scale).astype(jnp.bfloat16),
            (whhT.astype(jnp.float32) * scale).astype(jnp.bfloat16),
            (b.astype(jnp.float32) * scale),
        ]
    lin_w, lin_b = linear_params

    kernel = make_fused_kernel(n_layers=L, T=T, B=B, H=H)

    # No grid, no scratch: the entire working set (< 0.5 MiB) is resident in
    # VMEM for a single kernel invocation; inter-layer activations live in
    # vregs.  Only the (B,1) result is written back to HBM.
    return pl.pallas_call(
        kernel,
        out_shape=jax.ShapeDtypeStruct((B, 1), jnp.float32),
    )(x_flat, *flat_params, lin_w, lin_b)


# ----------------------------------------------------------------------------
# Pure-JAX reference (same math, lax.scan recurrence, f32 HIGHEST precision)
# ----------------------------------------------------------------------------
def lstm_reference(x_btf, layer_params, linear_params):
    hp = jax.lax.Precision.HIGHEST
    B, T, F = x_btf.shape
    seq = jnp.transpose(x_btf, (1, 0, 2)).astype(jnp.float32)  # (T, B, F)
    for (wihT, whhT, b) in layer_params:
        H = whhT.shape[0]

        def step(carry, x_t, wihT=wihT, whhT=whhT, b=b, H=H):
            h, c = carry
            gates = (jnp.dot(x_t, wihT, precision=hp)
                     + jnp.dot(h, whhT, precision=hp) + b)
            i = jax.nn.sigmoid(gates[:, 0 * H:1 * H])
            f = jax.nn.sigmoid(gates[:, 1 * H:2 * H])
            g = jnp.tanh(gates[:, 2 * H:3 * H])
            o = jax.nn.sigmoid(gates[:, 3 * H:4 * H])
            c = f * c + i * g
            h = o * jnp.tanh(c)
            return (h, c), h

        h0 = jnp.zeros((B, H), jnp.float32)
        c0 = jnp.zeros((B, H), jnp.float32)
        _, seq = jax.lax.scan(step, (h0, c0), seq)
    lw, lb = linear_params
    return jnp.dot(seq[-1], lw, precision=hp) + lb


# ----------------------------------------------------------------------------
# Deterministic parameter init (PyTorch-style U(-1/sqrt(H), 1/sqrt(H)))
# ----------------------------------------------------------------------------
def init_params(key, n_features, hidden_units, n_layers):
    bound = 1.0 / math.sqrt(hidden_units)
    layer_params = []
    for layer in range(n_layers):
        d_in = n_features if layer == 0 else hidden_units
        key, k1, k2, k3, k4 = jax.random.split(key, 5)
        w_ih = jax.random.uniform(k1, (4 * hidden_units, d_in),
                                  minval=-bound, maxval=bound, dtype=jnp.float32)
        w_hh = jax.random.uniform(k2, (4 * hidden_units, hidden_units),
                                  minval=-bound, maxval=bound, dtype=jnp.float32)
        b_ih = jax.random.uniform(k3, (4 * hidden_units,),
                                  minval=-bound, maxval=bound, dtype=jnp.float32)
        b_hh = jax.random.uniform(k4, (4 * hidden_units,),
                                  minval=-bound, maxval=bound, dtype=jnp.float32)
        # Pre-transpose weights and fuse biases.
        layer_params.append((w_ih.T, w_hh.T, (b_ih + b_hh)[None, :]))

    key, kw, kb = jax.random.split(key, 3)
    lin_w = jax.random.uniform(kw, (hidden_units, 1),
                               minval=-bound, maxval=bound, dtype=jnp.float32)
    lin_b = jax.random.uniform(kb, (1, 1),
                               minval=-bound, maxval=bound, dtype=jnp.float32)
    return layer_params, (lin_w, lin_b)


# ----------------------------------------------------------------------------
# Main
# ----------------------------------------------------------------------------
if __name__ == "__main__":
    # Small shapes consistent with the module: batch=2, seq=8, n_features=7,
    # hidden_units=32, n_layers=3 (kernel is generic over layer count).
    # TODO(synk): for batched serving, pad B up to 8 (full sublane tile) and/or
    # add a batch grid axis with dimension_semantics=("parallel",) for v7x.
    B, T, F = 2, 8, 7
    HIDDEN, N_LAYERS = 32, 3

    key = jax.random.PRNGKey(0)
    key, kx, kp = jax.random.split(key, 3)

    x = jax.random.normal(kx, (B, T, F), dtype=jnp.float32)
    layer_params, linear_params = init_params(kp, F, HIDDEN, N_LAYERS)

    out = lstm_forward(x, layer_params, linear_params)
    jax.block_until_ready(out)
    assert out.shape == (B, 1), out.shape

    ref = lstm_reference(x, layer_params, linear_params)
    # Tolerance accounts for bf16 MXU operands (f32 accumulation, f32 gate math).
    assert jnp.allclose(out, ref, atol=2e-2, rtol=2e-2), (out, ref)

    print("KERNEL_OK")
</pallas_src>

<mosaic_0001>
module attributes {stable_mosaic.version = 11 : i64} {
  func.func @kernel(%arg0: memref<16x7xbf16, #tpu.memory_space<vmem>>, %arg1: memref<7x128xbf16, #tpu.memory_space<vmem>>, %arg2: memref<32x128xbf16, #tpu.memory_space<vmem>>, %arg3: memref<1x128xf32, #tpu.memory_space<vmem>>, %arg4: memref<32x128xbf16, #tpu.memory_space<vmem>>, %arg5: memref<32x128xbf16, #tpu.memory_space<vmem>>, %arg6: memref<1x128xf32, #tpu.memory_space<vmem>>, %arg7: memref<32x128xbf16, #tpu.memory_space<vmem>>, %arg8: memref<32x128xbf16, #tpu.memory_space<vmem>>, %arg9: memref<1x128xf32, #tpu.memory_space<vmem>>, %arg10: memref<32x1xf32, #tpu.memory_space<vmem>>, %arg11: memref<1x1xf32, #tpu.memory_space<vmem>>, %arg12: memref<2x1xf32, #tpu.memory_space<vmem>>) attributes {dimension_semantics = [], scalar_prefetch = 0 : i64, scratch_operands = 0 : i64, tpu.core_type = #tpu.core_type<tc>} {
    %c0 = arith.constant 0 : index
    %c0_0 = arith.constant 0 : index
    %0 = vector.load %arg1[%c0, %c0_0] : memref<7x128xbf16, #tpu.memory_space<vmem>>, vector<7x128xbf16>
    %c0_1 = arith.constant 0 : index
    %c0_2 = arith.constant 0 : index
    %1 = vector.load %arg4[%c0_1, %c0_2] : memref<32x128xbf16, #tpu.memory_space<vmem>>, vector<32x128xbf16>
    %c0_3 = arith.constant 0 : index
    %c0_4 = arith.constant 0 : index
    %2 = vector.load %arg7[%c0_3, %c0_4] : memref<32x128xbf16, #tpu.memory_space<vmem>>, vector<32x128xbf16>
    %c0_5 = arith.constant 0 : index
    %c0_6 = arith.constant 0 : index
    %3 = vector.load %arg2[%c0_5, %c0_6] : memref<32x128xbf16, #tpu.memory_space<vmem>>, vector<32x128xbf16>
    %c0_7 = arith.constant 0 : index
    %c0_8 = arith.constant 0 : index
    %4 = vector.load %arg5[%c0_7, %c0_8] : memref<32x128xbf16, #tpu.memory_space<vmem>>, vector<32x128xbf16>
    %c0_9 = arith.constant 0 : index
    %c0_10 = arith.constant 0 : index
    %5 = vector.load %arg8[%c0_9, %c0_10] : memref<32x128xbf16, #tpu.memory_space<vmem>>, vector<32x128xbf16>
    %c0_11 = arith.constant 0 : index
    %c0_12 = arith.constant 0 : index
    %6 = vector.load %arg3[%c0_11, %c0_12] : memref<1x128xf32, #tpu.memory_space<vmem>>, vector<1x128xf32>
    %c0_13 = arith.constant 0 : index
    %c0_14 = arith.constant 0 : index
    %7 = vector.load %arg6[%c0_13, %c0_14] : memref<1x128xf32, #tpu.memory_space<vmem>>, vector<1x128xf32>
    %c0_15 = arith.constant 0 : index
    %c0_16 = arith.constant 0 : index
    %8 = vector.load %arg9[%c0_15, %c0_16] : memref<1x128xf32, #tpu.memory_space<vmem>>, vector<1x128xf32>
    %c0_17 = arith.constant 0 : index
    %c0_18 = arith.constant 0 : index
    %9 = vector.load %arg0[%c0_17, %c0_18] : memref<16x7xbf16, #tpu.memory_space<vmem>>, vector<16x7xbf16>
    %cst = arith.constant dense<0.000000e+00> : vector<16x128xf32>
    %10 = tpu.matmul %9, %0, %cst {dimension_numbers = #tpu.dot_dimension_numbers<[1], [0], [0], [1], [0, 0, 1, 1], [], []>} : vector<16x7xbf16>, vector<7x128xbf16>, vector<16x128xf32> -> vector<16x128xf32>
    %11 = vector.broadcast %6 : vector<1x128xf32> to vector<16x128xf32>
    %12 = arith.addf %10, %11 : vector<16x128xf32>
    %cst_19 = arith.constant 0.000000e+00 : bf16
    %13 = vector.broadcast %cst_19 : bf16 to vector<2x32xbf16>
    %cst_20 = arith.constant 0.000000e+00 : bf16
    %14 = vector.broadcast %cst_20 : bf16 to vector<2x32xbf16>
    %cst_21 = arith.constant 0.000000e+00 : bf16
    %15 = vector.broadcast %cst_21 : bf16 to vector<2x32xbf16>
    %cst_22 = arith.constant 0.000000e+00 : f32
    %16 = vector.broadcast %cst_22 : f32 to vector<2x32xf32>
    %cst_23 = arith.constant 0.000000e+00 : f32
    %17 = vector.broadcast %cst_23 : f32 to vector<2x32xf32>
    %cst_24 = arith.constant 0.000000e+00 : f32
    %18 = vector.broadcast %cst_24 : f32 to vector<2x32xf32>
    %cst_25 = arith.constant dense<0.000000e+00> : vector<2x128xf32>
    %19 = tpu.matmul %13, %3, %cst_25 {dimension_numbers = #tpu.dot_dimension_numbers<[1], [0], [0], [1], [0, 0, 1, 1], [], []>} : vector<2x32xbf16>, vector<32x128xbf16>, vector<2x128xf32> -> vector<2x128xf32>
    %20 = vector.extract_strided_slice %12 {offsets = [0, 0], sizes = [2, 128], strides = [1, 1]} : vector<16x128xf32> to vector<2x128xf32>
    %21 = arith.addf %20, %19 : vector<2x128xf32>
    %22 = math.tanh %21 : vector<2x128xf32>
    %23 = vector.extract_strided_slice %22 {offsets = [0, 0], sizes = [2, 32], strides = [1, 1]} : vector<2x128xf32> to vector<2x32xf32>
    %cst_26 = arith.constant 1.000000e+00 : f32
    %24 = vector.broadcast %cst_26 : f32 to vector<2x32xf32>
    %25 = arith.addf %23, %24 : vector<2x32xf32>
    %cst_27 = arith.constant 5.000000e-01 : f32
    %26 = vector.broadcast %cst_27 : f32 to vector<2x32xf32>
    %27 = arith.mulf %26, %25 : vector<2x32xf32>
    %28 = vector.extract_strided_slice %22 {offsets = [0, 32], sizes = [2, 32], strides = [1, 1]} : vector<2x128xf32> to vector<2x32xf32>
    %cst_28 = arith.constant 1.000000e+00 : f32
    %29 = vector.broadcast %cst_28 : f32 to vector<2x32xf32>
    %30 = arith.addf %28, %29 : vector<2x32xf32>
    %cst_29 = arith.constant 5.000000e-01 : f32
    %31 = vector.broadcast %cst_29 : f32 to vector<2x32xf32>
    %32 = arith.mulf %31, %30 : vector<2x32xf32>
    %33 = vector.extract_strided_slice %22 {offsets = [0, 64], sizes = [2, 32], strides = [1, 1]} : vector<2x128xf32> to vector<2x32xf32>
    %34 = vector.extract_strided_slice %22 {offsets = [0, 96], sizes = [2, 32], strides = [1, 1]} : vector<2x128xf32> to vector<2x32xf32>
    %cst_30 = arith.constant 1.000000e+00 : f32
    %35 = vector.broadcast %cst_30 : f32 to vector<2x32xf32>
    %36 = arith.addf %34, %35 : vector<2x32xf32>
    %cst_31 = arith.constant 5.000000e-01 : f32
    %37 = vector.broadcast %cst_31 : f32 to vector<2x32xf32>
    %38 = arith.mulf %37, %36 : vector<2x32xf32>
    %39 = arith.mulf %32, %16 : vector<2x32xf32>
    %40 = arith.mulf %27, %33 : vector<2x32xf32>
    %41 = arith.addf %39, %40 : vector<2x32xf32>
    %42 = math.tanh %41 : vector<2x32xf32>
    %43 = arith.mulf %38, %42 : vector<2x32xf32>
    %44 = arith.truncf %43 : vector<2x32xf32> to vector<2x32xbf16>
    %cst_32 = arith.constant dense<0.000000e+00> : vector<2x128xf32>
    %45 = tpu.matmul %44, %3, %cst_32 {dimension_numbers = #tpu.dot_dimension_numbers<[1], [0], [0], [1], [0, 0, 1, 1], [], []>} : vector<2x32xbf16>, vector<32x128xbf16>, vector<2x128xf32> -> vector<2x128xf32>
    %46 = vector.extract_strided_slice %12 {offsets = [2, 0], sizes = [2, 128], strides = [1, 1]} : vector<16x128xf32> to vector<2x128xf32>
    %47 = arith.addf %46, %45 : vector<2x128xf32>
    %48 = math.tanh %47 : vector<2x128xf32>
    %49 = vector.extract_strided_slice %48 {offsets = [0, 0], sizes = [2, 32], strides = [1, 1]} : vector<2x128xf32> to vector<2x32xf32>
    %cst_33 = arith.constant 1.000000e+00 : f32
    %50 = vector.broadcast %cst_33 : f32 to vector<2x32xf32>
    %51 = arith.addf %49, %50 : vector<2x32xf32>
    %cst_34 = arith.constant 5.000000e-01 : f32
    %52 = vector.broadcast %cst_34 : f32 to vector<2x32xf32>
    %53 = arith.mulf %52, %51 : vector<2x32xf32>
    %54 = vector.extract_strided_slice %48 {offsets = [0, 32], sizes = [2, 32], strides = [1, 1]} : vector<2x128xf32> to vector<2x32xf32>
    %cst_35 = arith.constant 1.000000e+00 : f32
    %55 = vector.broadcast %cst_35 : f32 to vector<2x32xf32>
    %56 = arith.addf %54, %55 : vector<2x32xf32>
    %cst_36 = arith.constant 5.000000e-01 : f32
    %57 = vector.broadcast %cst_36 : f32 to vector<2x32xf32>
    %58 = arith.mulf %57, %56 : vector<2x32xf32>
    %59 = vector.extract_strided_slice %48 {offsets = [0, 64], sizes = [2, 32], strides = [1, 1]} : vector<2x128xf32> to vector<2x32xf32>
    %60 = vector.extract_strided_slice %48 {offsets = [0, 96], sizes = [2, 32], strides = [1, 1]} : vector<2x128xf32> to vector<2x32xf32>
    %cst_37 = arith.constant 1.000000e+00 : f32
    %61 = vector.broadcast %cst_37 : f32 to vector<2x32xf32>
    %62 = arith.addf %60, %61 : vector<2x32xf32>
    %cst_38 = arith.constant 5.000000e-01 : f32
    %63 = vector.broadcast %cst_38 : f32 to vector<2x32xf32>
    %64 = arith.mulf %63, %62 : vector<2x32xf32>
    %65 = arith.mulf %58, %41 : vector<2x32xf32>
    %66 = arith.mulf %53, %59 : vector<2x32xf32>
    %67 = arith.addf %65, %66 : vector<2x32xf32>
    %68 = math.tanh %67 : vector<2x32xf32>
    %69 = arith.mulf %64, %68 : vector<2x32xf32>
    %70 = arith.truncf %69 : vector<2x32xf32> to vector<2x32xbf16>
    %cst_39 = arith.constant dense<0.000000e+00> : vector<2x128xf32>
    %71 = tpu.matmul %14, %4, %cst_39 {dimension_numbers = #tpu.dot_dimension_numbers<[1], [0], [0], [1], [0, 0, 1, 1], [], []>} : vector<2x32xbf16>, vector<32x128xbf16>, vector<2x128xf32> -> vector<2x128xf32>
    %cst_40 = arith.constant dense<0.000000e+00> : vector<2x128xf32>
    %72 = tpu.matmul %44, %1, %cst_40 {dimension_numbers = #tpu.dot_dimension_numbers<[1], [0], [0], [1], [0, 0, 1, 1], [], []>} : vector<2x32xbf16>, vector<32x128xbf16>, vector<2x128xf32> -> vector<2x128xf32>
    %73 = arith.addf %72, %71 : vector<2x128xf32>
    %74 = vector.broadcast %7 : vector<1x128xf32> to vector<2x128xf32>
    %75 = arith.addf %73, %74 : vector<2x128xf32>
    %76 = math.tanh %75 : vector<2x128xf32>
    %77 = vector.extract_strided_slice %76 {offsets = [0, 0], sizes = [2, 32], strides = [1, 1]} : vector<2x128xf32> to vector<2x32xf32>
    %cst_41 = arith.constant 1.000000e+00 : f32
    %78 = vector.broadcast %cst_41 : f32 to vector<2x32xf32>
    %79 = arith.addf %77, %78 : vector<2x32xf32>
    %cst_42 = arith.constant 5.000000e-01 : f32
    %80 = vector.broadcast %cst_42 : f32 to vector<2x32xf32>
    %81 = arith.mulf %80, %79 : vector<2x32xf32>
    %82 = vector.extract_strided_slice %76 {offsets = [0, 32], sizes = [2, 32], strides = [1, 1]} : vector<2x128xf32> to vector<2x32xf32>
    %cst_43 = arith.constant 1.000000e+00 : f32
    %83 = vector.broadcast %cst_43 : f32 to vector<2x32xf32>
    %84 = arith.addf %82, %83 : vector<2x32xf32>
    %cst_44 = arith.constant 5.000000e-01 : f32
    %85 = vector.broadcast %cst_44 : f32 to vector<2x32xf32>
    %86 = arith.mulf %85, %84 : vector<2x32xf32>
    %87 = vector.extract_strided_slice %76 {offsets = [0, 64], sizes = [2, 32], strides = [1, 1]} : vector<2x128xf32> to vector<2x32xf32>
    %88 = vector.extract_strided_slice %76 {offsets = [0, 96], sizes = [2, 32], strides = [1, 1]} : vector<2x128xf32> to vector<2x32xf32>
    %cst_45 = arith.constant 1.000000e+00 : f32
    %89 = vector.broadcast %cst_45 : f32 to vector<2x32xf32>
    %90 = arith.addf %88, %89 : vector<2x32xf32>
    %cst_46 = arith.constant 5.000000e-01 : f32
    %91 = vector.broadcast %cst_46 : f32 to vector<2x32xf32>
    %92 = arith.mulf %91, %90 : vector<2x32xf32>
    %93 = arith.mulf %86, %17 : vector<2x32xf32>
    %94 = arith.mulf %81, %87 : vector<2x32xf32>
    %95 = arith.addf %93, %94 : vector<2x32xf32>
    %96 = math.tanh %95 : vector<2x32xf32>
    %97 = arith.mulf %92, %96 : vector<2x32xf32>
    %98 = arith.truncf %97 : vector<2x32xf32> to vector<2x32xbf16>
    %cst_47 = arith.constant dense<0.000000e+00> : vector<2x128xf32>
    %99 = tpu.matmul %70, %3, %cst_47 {dimension_numbers = #tpu.dot_dimension_numbers<[1], [0], [0], [1], [0, 0, 1, 1], [], []>} : vector<2x32xbf16>, vector<32x128xbf16>, vector<2x128xf32> -> vector<2x128xf32>
    %100 = vector.extract_strided_slice %12 {offsets = [4, 0], sizes = [2, 128], strides = [1, 1]} : vector<16x128xf32> to vector<2x128xf32>
    %101 = arith.addf %100, %99 : vector<2x128xf32>
    %102 = math.tanh %101 : vector<2x128xf32>
    %103 = vector.extract_strided_slice %102 {offsets = [0, 0], sizes = [2, 32], strides = [1, 1]} : vector<2x128xf32> to vector<2x32xf32>
    %cst_48 = arith.constant 1.000000e+00 : f32
    %104 = vector.broadcast %cst_48 : f32 to vector<2x32xf32>
    %105 = arith.addf %103, %104 : vector<2x32xf32>
    %cst_49 = arith.constant 5.000000e-01 : f32
    %106 = vector.broadcast %cst_49 : f32 to vector<2x32xf32>
    %107 = arith.mulf %106, %105 : vector<2x32xf32>
    %108 = vector.extract_strided_slice %102 {offsets = [0, 32], sizes = [2, 32], strides = [1, 1]} : vector<2x128xf32> to vector<2x32xf32>
    %cst_50 = arith.constant 1.000000e+00 : f32
    %109 = vector.broadcast %cst_50 : f32 to vector<2x32xf32>
    %110 = arith.addf %108, %109 : vector<2x32xf32>
    %cst_51 = arith.constant 5.000000e-01 : f32
    %111 = vector.broadcast %cst_51 : f32 to vector<2x32xf32>
    %112 = arith.mulf %111, %110 : vector<2x32xf32>
    %113 = vector.extract_strided_slice %102 {offsets = [0, 64], sizes = [2, 32], strides = [1, 1]} : vector<2x128xf32> to vector<2x32xf32>
    %114 = vector.extract_strided_slice %102 {offsets = [0, 96], sizes = [2, 32], strides = [1, 1]} : vector<2x128xf32> to vector<2x32xf32>
    %cst_52 = arith.constant 1.000000e+00 : f32
    %115 = vector.broadcast %cst_52 : f32 to vector<2x32xf32>
    %116 = arith.addf %114, %115 : vector<2x32xf32>
    %cst_53 = arith.constant 5.000000e-01 : f32
    %117 = vector.broadcast %cst_53 : f32 to vector<2x32xf32>
    %118 = arith.mulf %117, %116 : vector<2x32xf32>
    %119 = arith.mulf %112, %67 : vector<2x32xf32>
    %120 = arith.mulf %107, %113 : vector<2x32xf32>
    %121 = arith.addf %119, %120 : vector<2x32xf32>
    %122 = math.tanh %121 : vector<2x32xf32>
    %123 = arith.mulf %118, %122 : vector<2x32xf32>
    %124 = arith.truncf %123 : vector<2x32xf32> to vector<2x32xbf16>
    %cst_54 = arith.constant dense<0.000000e+00> : vector<2x128xf32>
    %125 = tpu.matmul %98, %4, %cst_54 {dimension_numbers = #tpu.dot_dimension_numbers<[1], [0], [0], [1], [0, 0, 1, 1], [], []>} : vector<2x32xbf16>, vector<32x128xbf16>, vector<2x128xf32> -> vector<2x128xf32>
    %cst_55 = arith.constant dense<0.000000e+00> : vector<2x128xf32>
    %126 = tpu.matmul %70, %1, %cst_55 {dimension_numbers = #tpu.dot_dimension_numbers<[1], [0], [0], [1], [0, 0, 1, 1], [], []>} : vector<2x32xbf16>, vector<32x128xbf16>, vector<2x128xf32> -> vector<2x128xf32>
    %127 = arith.addf %126, %125 : vector<2x128xf32>
    %128 = vector.broadcast %7 : vector<1x128xf32> to vector<2x128xf32>
    %129 = arith.addf %127, %128 : vector<2x128xf32>
    %130 = math.tanh %129 : vector<2x128xf32>
    %131 = vector.extract_strided_slice %130 {offsets = [0, 0], sizes = [2, 32], strides = [1, 1]} : vector<2x128xf32> to vector<2x32xf32>
    %cst_56 = arith.constant 1.000000e+00 : f32
    %132 = vector.broadcast %cst_56 : f32 to vector<2x32xf32>
    %133 = arith.addf %131, %132 : vector<2x32xf32>
    %cst_57 = arith.constant 5.000000e-01 : f32
    %134 = vector.broadcast %cst_57 : f32 to vector<2x32xf32>
    %135 = arith.mulf %134, %133 : vector<2x32xf32>
    %136 = vector.extract_strided_slice %130 {offsets = [0, 32], sizes = [2, 32], strides = [1, 1]} : vector<2x128xf32> to vector<2x32xf32>
    %cst_58 = arith.constant 1.000000e+00 : f32
    %137 = vector.broadcast %cst_58 : f32 to vector<2x32xf32>
    %138 = arith.addf %136, %137 : vector<2x32xf32>
    %cst_59 = arith.constant 5.000000e-01 : f32
    %139 = vector.broadcast %cst_59 : f32 to vector<2x32xf32>
    %140 = arith.mulf %139, %138 : vector<2x32xf32>
    %141 = vector.extract_strided_slice %130 {offsets = [0, 64], sizes = [2, 32], strides = [1, 1]} : vector<2x128xf32> to vector<2x32xf32>
    %142 = vector.extract_strided_slice %130 {offsets = [0, 96], sizes = [2, 32], strides = [1, 1]} : vector<2x128xf32> to vector<2x32xf32>
    %cst_60 = arith.constant 1.000000e+00 : f32
    %143 = vector.broadcast %cst_60 : f32 to vector<2x32xf32>
    %144 = arith.addf %142, %143 : vector<2x32xf32>
    %cst_61 = arith.constant 5.000000e-01 : f32
    %145 = vector.broadcast %cst_61 : f32 to vector<2x32xf32>
    %146 = arith.mulf %145, %144 : vector<2x32xf32>
    %147 = arith.mulf %140, %95 : vector<2x32xf32>
    %148 = arith.mulf %135, %141 : vector<2x32xf32>
    %149 = arith.addf %147, %148 : vector<2x32xf32>
    %150 = math.tanh %149 : vector<2x32xf32>
    %151 = arith.mulf %146, %150 : vector<2x32xf32>
    %152 = arith.truncf %151 : vector<2x32xf32> to vector<2x32xbf16>
    %cst_62 = arith.constant dense<0.000000e+00> : vector<2x128xf32>
    %153 = tpu.matmul %15, %5, %cst_62 {dimension_numbers = #tpu.dot_dimension_numbers<[1], [0], [0], [1], [0, 0, 1, 1], [], []>} : vector<2x32xbf16>, vector<32x128xbf16>, vector<2x128xf32> -> vector<2x128xf32>
    %cst_63 = arith.constant dense<0.000000e+00> : vector<2x128xf32>
    %154 = tpu.matmul %98, %2, %cst_63 {dimension_numbers = #tpu.dot_dimension_numbers<[1], [0], [0], [1], [0, 0, 1, 1], [], []>} : vector<2x32xbf16>, vector<32x128xbf16>, vector<2x128xf32> -> vector<2x128xf32>
    %155 = arith.addf %154, %153 : vector<2x128xf32>
    %156 = vector.broadcast %8 : vector<1x128xf32> to vector<2x128xf32>
    %157 = arith.addf %155, %156 : vector<2x128xf32>
    %158 = math.tanh %157 : vector<2x128xf32>
    %159 = vector.extract_strided_slice %158 {offsets = [0, 0], sizes = [2, 32], strides = [1, 1]} : vector<2x128xf32> to vector<2x32xf32>
    %cst_64 = arith.constant 1.000000e+00 : f32
    %160 = vector.broadcast %cst_64 : f32 to vector<2x32xf32>
    %161 = arith.addf %159, %160 : vector<2x32xf32>
    %cst_65 = arith.constant 5.000000e-01 : f32
    %162 = vector.broadcast %cst_65 : f32 to vector<2x32xf32>
    %163 = arith.mulf %162, %161 : vector<2x32xf32>
    %164 = vector.extract_strided_slice %158 {offsets = [0, 32], sizes = [2, 32], strides = [1, 1]} : vector<2x128xf32> to vector<2x32xf32>
    %cst_66 = arith.constant 1.000000e+00 : f32
    %165 = vector.broadcast %cst_66 : f32 to vector<2x32xf32>
    %166 = arith.addf %164, %165 : vector<2x32xf32>
    %cst_67 = arith.constant 5.000000e-01 : f32
    %167 = vector.broadcast %cst_67 : f32 to vector<2x32xf32>
    %168 = arith.mulf %167, %166 : vector<2x32xf32>
    %169 = vector.extract_strided_slice %158 {offsets = [0, 64], sizes = [2, 32], strides = [1, 1]} : vector<2x128xf32> to vector<2x32xf32>
    %170 = vector.extract_strided_slice %158 {offsets = [0, 96], sizes = [2, 32], strides = [1, 1]} : vector<2x128xf32> to vector<2x32xf32>
    %cst_68 = arith.constant 1.000000e+00 : f32
    %171 = vector.broadcast %cst_68 : f32 to vector<2x32xf32>
    %172 = arith.addf %170, %171 : vector<2x32xf32>
    %cst_69 = arith.constant 5.000000e-01 : f32
    %173 = vector.broadcast %cst_69 : f32 to vector<2x32xf32>
    %174 = arith.mulf %173, %172 : vector<2x32xf32>
    %175 = arith.mulf %168, %18 : vector<2x32xf32>
    %176 = arith.mulf %163, %169 : vector<2x32xf32>
    %177 = arith.addf %175, %176 : vector<2x32xf32>
    %178 = math.tanh %177 : vector<2x32xf32>
    %179 = arith.mulf %174, %178 : vector<2x32xf32>
    %180 = arith.truncf %179 : vector<2x32xf32> to vector<2x32xbf16>
    %cst_70 = arith.constant dense<0.000000e+00> : vector<2x128xf32>
    %181 = tpu.matmul %124, %3, %cst_70 {dimension_numbers = #tpu.dot_dimension_numbers<[1], [0], [0], [1], [0, 0, 1, 1], [], []>} : vector<2x32xbf16>, vector<32x128xbf16>, vector<2x128xf32> -> vector<2x128xf32>
    %182 = vector.extract_strided_slice %12 {offsets = [6, 0], sizes = [2, 128], strides = [1, 1]} : vector<16x128xf32> to vector<2x128xf32>
    %183 = arith.addf %182, %181 : vector<2x128xf32>
    %184 = math.tanh %183 : vector<2x128xf32>
    %185 = vector.extract_strided_slice %184 {offsets = [0, 0], sizes = [2, 32], strides = [1, 1]} : vector<2x128xf32> to vector<2x32xf32>
    %cst_71 = arith.constant 1.000000e+00 : f32
    %186 = vector.broadcast %cst_71 : f32 to vector<2x32xf32>
    %187 = arith.addf %185, %186 : vector<2x32xf32>
    %cst_72 = arith.constant 5.000000e-01 : f32
    %188 = vector.broadcast %cst_72 : f32 to vector<2x32xf32>
    %189 = arith.mulf %188, %187 : vector<2x32xf32>
    %190 = vector.extract_strided_slice %184 {offsets = [0, 32], sizes = [2, 32], strides = [1, 1]} : vector<2x128xf32> to vector<2x32xf32>
    %cst_73 = arith.constant 1.000000e+00 : f32
    %191 = vector.broadcast %cst_73 : f32 to vector<2x32xf32>
    %192 = arith.addf %190, %191 : vector<2x32xf32>
    %cst_74 = arith.constant 5.000000e-01 : f32
    %193 = vector.broadcast %cst_74 : f32 to vector<2x32xf32>
    %194 = arith.mulf %193, %192 : vector<2x32xf32>
    %195 = vector.extract_strided_slice %184 {offsets = [0, 64], sizes = [2, 32], strides = [1, 1]} : vector<2x128xf32> to vector<2x32xf32>
    %196 = vector.extract_strided_slice %184 {offsets = [0, 96], sizes = [2, 32], strides = [1, 1]} : vector<2x128xf32> to vector<2x32xf32>
    %cst_75 = arith.constant 1.000000e+00 : f32
    %197 = vector.broadcast %cst_75 : f32 to vector<2x32xf32>
    %198 = arith.addf %196, %197 : vector<2x32xf32>
    %cst_76 = arith.constant 5.000000e-01 : f32
    %199 = vector.broadcast %cst_76 : f32 to vector<2x32xf32>
    %200 = arith.mulf %199, %198 : vector<2x32xf32>
    %201 = arith.mulf %194, %121 : vector<2x32xf32>
    %202 = arith.mulf %189, %195 : vector<2x32xf32>
    %203 = arith.addf %201, %202 : vector<2x32xf32>
    %204 = math.tanh %203 : vector<2x32xf32>
    %205 = arith.mulf %200, %204 : vector<2x32xf32>
    %206 = arith.truncf %205 : vector<2x32xf32> to vector<2x32xbf16>
    %cst_77 = arith.constant dense<0.000000e+00> : vector<2x128xf32>
    %207 = tpu.matmul %152, %4, %cst_77 {dimension_numbers = #tpu.dot_dimension_numbers<[1], [0], [0], [1], [0, 0, 1, 1], [], []>} : vector<2x32xbf16>, vector<32x128xbf16>, vector<2x128xf32> -> vector<2x128xf32>
    %cst_78 = arith.constant dense<0.000000e+00> : vector<2x128xf32>
    %208 = tpu.matmul %124, %1, %cst_78 {dimension_numbers = #tpu.dot_dimension_numbers<[1], [0], [0], [1], [0, 0, 1, 1], [], []>} : vector<2x32xbf16>, vector<32x128xbf16>, vector<2x128xf32> -> vector<2x128xf32>
    %209 = arith.addf %208, %207 : vector<2x128xf32>
    %210 = vector.broadcast %7 : vector<1x128xf32> to vector<2x128xf32>
    %211 = arith.addf %209, %210 : vector<2x128xf32>
    %212 = math.tanh %211 : vector<2x128xf32>
    %213 = vector.extract_strided_slice %212 {offsets = [0, 0], sizes = [2, 32], strides = [1, 1]} : vector<2x128xf32> to vector<2x32xf32>
    %cst_79 = arith.constant 1.000000e+00 : f32
    %214 = vector.broadcast %cst_79 : f32 to vector<2x32xf32>
    %215 = arith.addf %213, %214 : vector<2x32xf32>
    %cst_80 = arith.constant 5.000000e-01 : f32
    %216 = vector.broadcast %cst_80 : f32 to vector<2x32xf32>
    %217 = arith.mulf %216, %215 : vector<2x32xf32>
    %218 = vector.extract_strided_slice %212 {offsets = [0, 32], sizes = [2, 32], strides = [1, 1]} : vector<2x128xf32> to vector<2x32xf32>
    %cst_81 = arith.constant 1.000000e+00 : f32
    %219 = vector.broadcast %cst_81 : f32 to vector<2x32xf32>
    %220 = arith.addf %218, %219 : vector<2x32xf32>
    %cst_82 = arith.constant 5.000000e-01 : f32
    %221 = vector.broadcast %cst_82 : f32 to vector<2x32xf32>
    %222 = arith.mulf %221, %220 : vector<2x32xf32>
    %223 = vector.extract_strided_slice %212 {offsets = [0, 64], sizes = [2, 32], strides = [1, 1]} : vector<2x128xf32> to vector<2x32xf32>
    %224 = vector.extract_strided_slice %212 {offsets = [0, 96], sizes = [2, 32], strides = [1, 1]} : vector<2x128xf32> to vector<2x32xf32>
    %cst_83 = arith.constant 1.000000e+00 : f32
    %225 = vector.broadcast %cst_83 : f32 to vector<2x32xf32>
    %226 = arith.addf %224, %225 : vector<2x32xf32>
    %cst_84 = arith.constant 5.000000e-01 : f32
    %227 = vector.broadcast %cst_84 : f32 to vector<2x32xf32>
    %228 = arith.mulf %227, %226 : vector<2x32xf32>
    %229 = arith.mulf %222, %149 : vector<2x32xf32>
    %230 = arith.mulf %217, %223 : vector<2x32xf32>
    %231 = arith.addf %229, %230 : vector<2x32xf32>
    %232 = math.tanh %231 : vector<2x32xf32>
    %233 = arith.mulf %228, %232 : vector<2x32xf32>
    %234 = arith.truncf %233 : vector<2x32xf32> to vector<2x32xbf16>
    %cst_85 = arith.constant dense<0.000000e+00> : vector<2x128xf32>
    %235 = tpu.matmul %180, %5, %cst_85 {dimension_numbers = #tpu.dot_dimension_numbers<[1], [0], [0], [1], [0, 0, 1, 1], [], []>} : vector<2x32xbf16>, vector<32x128xbf16>, vector<2x128xf32> -> vector<2x128xf32>
    %cst_86 = arith.constant dense<0.000000e+00> : vector<2x128xf32>
    %236 = tpu.matmul %152, %2, %cst_86 {dimension_numbers = #tpu.dot_dimension_numbers<[1], [0], [0], [1], [0, 0, 1, 1], [], []>} : vector<2x32xbf16>, vector<32x128xbf16>, vector<2x128xf32> -> vector<2x128xf32>
    %237 = arith.addf %236, %235 : vector<2x128xf32>
    %238 = vector.broadcast %8 : vector<1x128xf32> to vector<2x128xf32>
    %239 = arith.addf %237, %238 : vector<2x128xf32>
    %240 = math.tanh %239 : vector<2x128xf32>
    %241 = vector.extract_strided_slice %240 {offsets = [0, 0], sizes = [2, 32], strides = [1, 1]} : vector<2x128xf32> to vector<2x32xf32>
    %cst_87 = arith.constant 1.000000e+00 : f32
    %242 = vector.broadcast %cst_87 : f32 to vector<2x32xf32>
    %243 = arith.addf %241, %242 : vector<2x32xf32>
    %cst_88 = arith.constant 5.000000e-01 : f32
    %244 = vector.broadcast %cst_88 : f32 to vector<2x32xf32>
    %245 = arith.mulf %244, %243 : vector<2x32xf32>
    %246 = vector.extract_strided_slice %240 {offsets = [0, 32], sizes = [2, 32], strides = [1, 1]} : vector<2x128xf32> to vector<2x32xf32>
    %cst_89 = arith.constant 1.000000e+00 : f32
    %247 = vector.broadcast %cst_89 : f32 to vector<2x32xf32>
    %248 = arith.addf %246, %247 : vector<2x32xf32>
    %cst_90 = arith.constant 5.000000e-01 : f32
    %249 = vector.broadcast %cst_90 : f32 to vector<2x32xf32>
    %250 = arith.mulf %249, %248 : vector<2x32xf32>
    %251 = vector.extract_strided_slice %240 {offsets = [0, 64], sizes = [2, 32], strides = [1, 1]} : vector<2x128xf32> to vector<2x32xf32>
    %252 = vector.extract_strided_slice %240 {offsets = [0, 96], sizes = [2, 32], strides = [1, 1]} : vector<2x128xf32> to vector<2x32xf32>
    %cst_91 = arith.constant 1.000000e+00 : f32
    %253 = vector.broadcast %cst_91 : f32 to vector<2x32xf32>
    %254 = arith.addf %252, %253 : vector<2x32xf32>
    %cst_92 = arith.constant 5.000000e-01 : f32
    %255 = vector.broadcast %cst_92 : f32 to vector<2x32xf32>
    %256 = arith.mulf %255, %254 : vector<2x32xf32>
    %257 = arith.mulf %250, %177 : vector<2x32xf32>
    %258 = arith.mulf %245, %251 : vector<2x32xf32>
    %259 = arith.addf %257, %258 : vector<2x32xf32>
    %260 = math.tanh %259 : vector<2x32xf32>
    %261 = arith.mulf %256, %260 : vector<2x32xf32>
    %262 = arith.truncf %261 : vector<2x32xf32> to vector<2x32xbf16>
    %cst_93 = arith.constant dense<0.000000e+00> : vector<2x128xf32>
    %263 = tpu.matmul %206, %3, %cst_93 {dimension_numbers = #tpu.dot_dimension_numbers<[1], [0], [0], [1], [0, 0, 1, 1], [], []>} : vector<2x32xbf16>, vector<32x128xbf16>, vector<2x128xf32> -> vector<2x128xf32>
    %264 = vector.extract_strided_slice %12 {offsets = [8, 0], sizes = [2, 128], strides = [1, 1]} : vector<16x128xf32> to vector<2x128xf32>
    %265 = arith.addf %264, %263 : vector<2x128xf32>
    %266 = math.tanh %265 : vector<2x128xf32>
    %267 = vector.extract_strided_slice %266 {offsets = [0, 0], sizes = [2, 32], strides = [1, 1]} : vector<2x128xf32> to vector<2x32xf32>
    %cst_94 = arith.constant 1.000000e+00 : f32
    %268 = vector.broadcast %cst_94 : f32 to vector<2x32xf32>
    %269 = arith.addf %267, %268 : vector<2x32xf32>
    %cst_95 = arith.constant 5.000000e-01 : f32
    %270 = vector.broadcast %cst_95 : f32 to vector<2x32xf32>
    %271 = arith.mulf %270, %269 : vector<2x32xf32>
    %272 = vector.extract_strided_slice %266 {offsets = [0, 32], sizes = [2, 32], strides = [1, 1]} : vector<2x128xf32> to vector<2x32xf32>
    %cst_96 = arith.constant 1.000000e+00 : f32
    %273 = vector.broadcast %cst_96 : f32 to vector<2x32xf32>
    %274 = arith.addf %272, %273 : vector<2x32xf32>
    %cst_97 = arith.constant 5.000000e-01 : f32
    %275 = vector.broadcast %cst_97 : f32 to vector<2x32xf32>
    %276 = arith.mulf %275, %274 : vector<2x32xf32>
    %277 = vector.extract_strided_slice %266 {offsets = [0, 64], sizes = [2, 32], strides = [1, 1]} : vector<2x128xf32> to vector<2x32xf32>
    %278 = vector.extract_strided_slice %266 {offsets = [0, 96], sizes = [2, 32], strides = [1, 1]} : vector<2x128xf32> to vector<2x32xf32>
    %cst_98 = arith.constant 1.000000e+00 : f32
    %279 = vector.broadcast %cst_98 : f32 to vector<2x32xf32>
    %280 = arith.addf %278, %279 : vector<2x32xf32>
    %cst_99 = arith.constant 5.000000e-01 : f32
    %281 = vector.broadcast %cst_99 : f32 to vector<2x32xf32>
    %282 = arith.mulf %281, %280 : vector<2x32xf32>
    %283 = arith.mulf %276, %203 : vector<2x32xf32>
    %284 = arith.mulf %271, %277 : vector<2x32xf32>
    %285 = arith.addf %283, %284 : vector<2x32xf32>
    %286 = math.tanh %285 : vector<2x32xf32>
    %287 = arith.mulf %282, %286 : vector<2x32xf32>
    %288 = arith.truncf %287 : vector<2x32xf32> to vector<2x32xbf16>
    %cst_100 = arith.constant dense<0.000000e+00> : vector<2x128xf32>
    %289 = tpu.matmul %234, %4, %cst_100 {dimension_numbers = #tpu.dot_dimension_numbers<[1], [0], [0], [1], [0, 0, 1, 1], [], []>} : vector<2x32xbf16>, vector<32x128xbf16>, vector<2x128xf32> -> vector<2x128xf32>
    %cst_101 = arith.constant dense<0.000000e+00> : vector<2x128xf32>
    %290 = tpu.matmul %206, %1, %cst_101 {dimension_numbers = #tpu.dot_dimension_numbers<[1], [0], [0], [1], [0, 0, 1, 1], [], []>} : vector<2x32xbf16>, vector<32x128xbf16>, vector<2x128xf32> -> vector<2x128xf32>
    %291 = arith.addf %290, %289 : vector<2x128xf32>
    %292 = vector.broadcast %7 : vector<1x128xf32> to vector<2x128xf32>
    %293 = arith.addf %291, %292 : vector<2x128xf32>
    %294 = math.tanh %293 : vector<2x128xf32>
    %295 = vector.extract_strided_slice %294 {offsets = [0, 0], sizes = [2, 32], strides = [1, 1]} : vector<2x128xf32> to vector<2x32xf32>
    %cst_102 = arith.constant 1.000000e+00 : f32
    %296 = vector.broadcast %cst_102 : f32 to vector<2x32xf32>
    %297 = arith.addf %295, %296 : vector<2x32xf32>
    %cst_103 = arith.constant 5.000000e-01 : f32
    %298 = vector.broadcast %cst_103 : f32 to vector<2x32xf32>
    %299 = arith.mulf %298, %297 : vector<2x32xf32>
    %300 = vector.extract_strided_slice %294 {offsets = [0, 32], sizes = [2, 32], strides = [1, 1]} : vector<2x128xf32> to vector<2x32xf32>
    %cst_104 = arith.constant 1.000000e+00 : f32
    %301 = vector.broadcast %cst_104 : f32 to vector<2x32xf32>
    %302 = arith.addf %300, %301 : vector<2x32xf32>
    %cst_105 = arith.constant 5.000000e-01 : f32
    %303 = vector.broadcast %cst_105 : f32 to vector<2x32xf32>
    %304 = arith.mulf %303, %302 : vector<2x32xf32>
    %305 = vector.extract_strided_slice %294 {offsets = [0, 64], sizes = [2, 32], strides = [1, 1]} : vector<2x128xf32> to vector<2x32xf32>
    %306 = vector.extract_strided_slice %294 {offsets = [0, 96], sizes = [2, 32], strides = [1, 1]} : vector<2x128xf32> to vector<2x32xf32>
    %cst_106 = arith.constant 1.000000e+00 : f32
    %307 = vector.broadcast %cst_106 : f32 to vector<2x32xf32>
    %308 = arith.addf %306, %307 : vector<2x32xf32>
    %cst_107 = arith.constant 5.000000e-01 : f32
    %309 = vector.broadcast %cst_107 : f32 to vector<2x32xf32>
    %310 = arith.mulf %309, %308 : vector<2x32xf32>
    %311 = arith.mulf %304, %231 : vector<2x32xf32>
    %312 = arith.mulf %299, %305 : vector<2x32xf32>
    %313 = arith.addf %311, %312 : vector<2x32xf32>
    %314 = math.tanh %313 : vector<2x32xf32>
    %315 = arith.mulf %310, %314 : vector<2x32xf32>
    %316 = arith.truncf %315 : vector<2x32xf32> to vector<2x32xbf16>
    %cst_108 = arith.constant dense<0.000000e+00> : vector<2x128xf32>
    %317 = tpu.matmul %262, %5, %cst_108 {dimension_numbers = #tpu.dot_dimension_numbers<[1], [0], [0], [1], [0, 0, 1, 1], [], []>} : vector<2x32xbf16>, vector<32x128xbf16>, vector<2x128xf32> -> vector<2x128xf32>
    %cst_109 = arith.constant dense<0.000000e+00> : vector<2x128xf32>
    %318 = tpu.matmul %234, %2, %cst_109 {dimension_numbers = #tpu.dot_dimension_numbers<[1], [0], [0], [1], [0, 0, 1, 1], [], []>} : vector<2x32xbf16>, vector<32x128xbf16>, vector<2x128xf32> -> vector<2x128xf32>
    %319 = arith.addf %318, %317 : vector<2x128xf32>
    %320 = vector.broadcast %8 : vector<1x128xf32> to vector<2x128xf32>
    %321 = arith.addf %319, %320 : vector<2x128xf32>
    %322 = math.tanh %321 : vector<2x128xf32>
    %323 = vector.extract_strided_slice %322 {offsets = [0, 0], sizes = [2, 32], strides = [1, 1]} : vector<2x128xf32> to vector<2x32xf32>
    %cst_110 = arith.constant 1.000000e+00 : f32
    %324 = vector.broadcast %cst_110 : f32 to vector<2x32xf32>
    %325 = arith.addf %323, %324 : vector<2x32xf32>
    %cst_111 = arith.constant 5.000000e-01 : f32
    %326 = vector.broadcast %cst_111 : f32 to vector<2x32xf32>
    %327 = arith.mulf %326, %325 : vector<2x32xf32>
    %328 = vector.extract_strided_slice %322 {offsets = [0, 32], sizes = [2, 32], strides = [1, 1]} : vector<2x128xf32> to vector<2x32xf32>
    %cst_112 = arith.constant 1.000000e+00 : f32
    %329 = vector.broadcast %cst_112 : f32 to vector<2x32xf32>
    %330 = arith.addf %328, %329 : vector<2x32xf32>
    %cst_113 = arith.constant 5.000000e-01 : f32
    %331 = vector.broadcast %cst_113 : f32 to vector<2x32xf32>
    %332 = arith.mulf %331, %330 : vector<2x32xf32>
    %333 = vector.extract_strided_slice %322 {offsets = [0, 64], sizes = [2, 32], strides = [1, 1]} : vector<2x128xf32> to vector<2x32xf32>
    %334 = vector.extract_strided_slice %322 {offsets = [0, 96], sizes = [2, 32], strides = [1, 1]} : vector<2x128xf32> to vector<2x32xf32>
    %cst_114 = arith.constant 1.000000e+00 : f32
    %335 = vector.broadcast %cst_114 : f32 to vector<2x32xf32>
    %336 = arith.addf %334, %335 : vector<2x32xf32>
    %cst_115 = arith.constant 5.000000e-01 : f32
    %337 = vector.broadcast %cst_115 : f32 to vector<2x32xf32>
    %338 = arith.mulf %337, %336 : vector<2x32xf32>
    %339 = arith.mulf %332, %259 : vector<2x32xf32>
    %340 = arith.mulf %327, %333 : vector<2x32xf32>
    %341 = arith.addf %339, %340 : vector<2x32xf32>
    %342 = math.tanh %341 : vector<2x32xf32>
    %343 = arith.mulf %338, %342 : vector<2x32xf32>
    %344 = arith.truncf %343 : vector<2x32xf32> to vector<2x32xbf16>
    %cst_116 = arith.constant dense<0.000000e+00> : vector<2x128xf32>
    %345 = tpu.matmul %288, %3, %cst_116 {dimension_numbers = #tpu.dot_dimension_numbers<[1], [0], [0], [1], [0, 0, 1, 1], [], []>} : vector<2x32xbf16>, vector<32x128xbf16>, vector<2x128xf32> -> vector<2x128xf32>
    %346 = vector.extract_strided_slice %12 {offsets = [10, 0], sizes = [2, 128], strides = [1, 1]} : vector<16x128xf32> to vector<2x128xf32>
    %347 = arith.addf %346, %345 : vector<2x128xf32>
    %348 = math.tanh %347 : vector<2x128xf32>
    %349 = vector.extract_strided_slice %348 {offsets = [0, 0], sizes = [2, 32], strides = [1, 1]} : vector<2x128xf32> to vector<2x32xf32>
    %cst_117 = arith.constant 1.000000e+00 : f32
    %350 = vector.broadcast %cst_117 : f32 to vector<2x32xf32>
    %351 = arith.addf %349, %350 : vector<2x32xf32>
    %cst_118 = arith.constant 5.000000e-01 : f32
    %352 = vector.broadcast %cst_118 : f32 to vector<2x32xf32>
    %353 = arith.mulf %352, %351 : vector<2x32xf32>
    %354 = vector.extract_strided_slice %348 {offsets = [0, 32], sizes = [2, 32], strides = [1, 1]} : vector<2x128xf32> to vector<2x32xf32>
    %cst_119 = arith.constant 1.000000e+00 : f32
    %355 = vector.broadcast %cst_119 : f32 to vector<2x32xf32>
    %356 = arith.addf %354, %355 : vector<2x32xf32>
    %cst_120 = arith.constant 5.000000e-01 : f32
    %357 = vector.broadcast %cst_120 : f32 to vector<2x32xf32>
    %358 = arith.mulf %357, %356 : vector<2x32xf32>
    %359 = vector.extract_strided_slice %348 {offsets = [0, 64], sizes = [2, 32], strides = [1, 1]} : vector<2x128xf32> to vector<2x32xf32>
    %360 = vector.extract_strided_slice %348 {offsets = [0, 96], sizes = [2, 32], strides = [1, 1]} : vector<2x128xf32> to vector<2x32xf32>
    %cst_121 = arith.constant 1.000000e+00 : f32
    %361 = vector.broadcast %cst_121 : f32 to vector<2x32xf32>
    %362 = arith.addf %360, %361 : vector<2x32xf32>
    %cst_122 = arith.constant 5.000000e-01 : f32
    %363 = vector.broadcast %cst_122 : f32 to vector<2x32xf32>
    %364 = arith.mulf %363, %362 : vector<2x32xf32>
    %365 = arith.mulf %358, %285 : vector<2x32xf32>
    %366 = arith.mulf %353, %359 : vector<2x32xf32>
    %367 = arith.addf %365, %366 : vector<2x32xf32>
    %368 = math.tanh %367 : vector<2x32xf32>
    %369 = arith.mulf %364, %368 : vector<2x32xf32>
    %370 = arith.truncf %369 : vector<2x32xf32> to vector<2x32xbf16>
    %cst_123 = arith.constant dense<0.000000e+00> : vector<2x128xf32>
    %371 = tpu.matmul %316, %4, %cst_123 {dimension_numbers = #tpu.dot_dimension_numbers<[1], [0], [0], [1], [0, 0, 1, 1], [], []>} : vector<2x32xbf16>, vector<32x128xbf16>, vector<2x128xf32> -> vector<2x128xf32>
    %cst_124 = arith.constant dense<0.000000e+00> : vector<2x128xf32>
    %372 = tpu.matmul %288, %1, %cst_124 {dimension_numbers = #tpu.dot_dimension_numbers<[1], [0], [0], [1], [0, 0, 1, 1], [], []>} : vector<2x32xbf16>, vector<32x128xbf16>, vector<2x128xf32> -> vector<2x128xf32>
    %373 = arith.addf %372, %371 : vector<2x128xf32>
    %374 = vector.broadcast %7 : vector<1x128xf32> to vector<2x128xf32>
    %375 = arith.addf %373, %374 : vector<2x128xf32>
    %376 = math.tanh %375 : vector<2x128xf32>
    %377 = vector.extract_strided_slice %376 {offsets = [0, 0], sizes = [2, 32], strides = [1, 1]} : vector<2x128xf32> to vector<2x32xf32>
    %cst_125 = arith.constant 1.000000e+00 : f32
    %378 = vector.broadcast %cst_125 : f32 to vector<2x32xf32>
    %379 = arith.addf %377, %378 : vector<2x32xf32>
    %cst_126 = arith.constant 5.000000e-01 : f32
    %380 = vector.broadcast %cst_126 : f32 to vector<2x32xf32>
    %381 = arith.mulf %380, %379 : vector<2x32xf32>
    %382 = vector.extract_strided_slice %376 {offsets = [0, 32], sizes = [2, 32], strides = [1, 1]} : vector<2x128xf32> to vector<2x32xf32>
    %cst_127 = arith.constant 1.000000e+00 : f32
    %383 = vector.broadcast %cst_127 : f32 to vector<2x32xf32>
    %384 = arith.addf %382, %383 : vector<2x32xf32>
    %cst_128 = arith.constant 5.000000e-01 : f32
    %385 = vector.broadcast %cst_128 : f32 to vector<2x32xf32>
    %386 = arith.mulf %385, %384 : vector<2x32xf32>
    %387 = vector.extract_strided_slice %376 {offsets = [0, 64], sizes = [2, 32], strides = [1, 1]} : vector<2x128xf32> to vector<2x32xf32>
    %388 = vector.extract_strided_slice %376 {offsets = [0, 96], sizes = [2, 32], strides = [1, 1]} : vector<2x128xf32> to vector<2x32xf32>
    %cst_129 = arith.constant 1.000000e+00 : f32
    %389 = vector.broadcast %cst_129 : f32 to vector<2x32xf32>
    %390 = arith.addf %388, %389 : vector<2x32xf32>
    %cst_130 = arith.constant 5.000000e-01 : f32
    %391 = vector.broadcast %cst_130 : f32 to vector<2x32xf32>
    %392 = arith.mulf %391, %390 : vector<2x32xf32>
    %393 = arith.mulf %386, %313 : vector<2x32xf32>
    %394 = arith.mulf %381, %387 : vector<2x32xf32>
    %395 = arith.addf %393, %394 : vector<2x32xf32>
    %396 = math.tanh %395 : vector<2x32xf32>
    %397 = arith.mulf %392, %396 : vector<2x32xf32>
    %398 = arith.truncf %397 : vector<2x32xf32> to vector<2x32xbf16>
    %cst_131 = arith.constant dense<0.000000e+00> : vector<2x128xf32>
    %399 = tpu.matmul %344, %5, %cst_131 {dimension_numbers = #tpu.dot_dimension_numbers<[1], [0], [0], [1], [0, 0, 1, 1], [], []>} : vector<2x32xbf16>, vector<32x128xbf16>, vector<2x128xf32> -> vector<2x128xf32>
    %cst_132 = arith.constant dense<0.000000e+00> : vector<2x128xf32>
    %400 = tpu.matmul %316, %2, %cst_132 {dimension_numbers = #tpu.dot_dimension_numbers<[1], [0], [0], [1], [0, 0, 1, 1], [], []>} : vector<2x32xbf16>, vector<32x128xbf16>, vector<2x128xf32> -> vector<2x128xf32>
    %401 = arith.addf %400, %399 : vector<2x128xf32>
    %402 = vector.broadcast %8 : vector<1x128xf32> to vector<2x128xf32>
    %403 = arith.addf %401, %402 : vector<2x128xf32>
    %404 = math.tanh %403 : vector<2x128xf32>
    %405 = vector.extract_strided_slice %404 {offsets = [0, 0], sizes = [2, 32], strides = [1, 1]} : vector<2x128xf32> to vector<2x32xf32>
    %cst_133 = arith.constant 1.000000e+00 : f32
    %406 = vector.broadcast %cst_133 : f32 to vector<2x32xf32>
    %407 = arith.addf %405, %406 : vector<2x32xf32>
    %cst_134 = arith.constant 5.000000e-01 : f32
    %408 = vector.broadcast %cst_134 : f32 to vector<2x32xf32>
    %409 = arith.mulf %408, %407 : vector<2x32xf32>
    %410 = vector.extract_strided_slice %404 {offsets = [0, 32], sizes = [2, 32], strides = [1, 1]} : vector<2x128xf32> to vector<2x32xf32>
    %cst_135 = arith.constant 1.000000e+00 : f32
    %411 = vector.broadcast %cst_135 : f32 to vector<2x32xf32>
    %412 = arith.addf %410, %411 : vector<2x32xf32>
    %cst_136 = arith.constant 5.000000e-01 : f32
    %413 = vector.broadcast %cst_136 : f32 to vector<2x32xf32>
    %414 = arith.mulf %413, %412 : vector<2x32xf32>
    %415 = vector.extract_strided_slice %404 {offsets = [0, 64], sizes = [2, 32], strides = [1, 1]} : vector<2x128xf32> to vector<2x32xf32>
    %416 = vector.extract_strided_slice %404 {offsets = [0, 96], sizes = [2, 32], strides = [1, 1]} : vector<2x128xf32> to vector<2x32xf32>
    %cst_137 = arith.constant 1.000000e+00 : f32
    %417 = vector.broadcast %cst_137 : f32 to vector<2x32xf32>
    %418 = arith.addf %416, %417 : vector<2x32xf32>
    %cst_138 = arith.constant 5.000000e-01 : f32
    %419 = vector.broadcast %cst_138 : f32 to vector<2x32xf32>
    %420 = arith.mulf %419, %418 : vector<2x32xf32>
    %421 = arith.mulf %414, %341 : vector<2x32xf32>
    %422 = arith.mulf %409, %415 : vector<2x32xf32>
    %423 = arith.addf %421, %422 : vector<2x32xf32>
    %424 = math.tanh %423 : vector<2x32xf32>
    %425 = arith.mulf %420, %424 : vector<2x32xf32>
    %426 = arith.truncf %425 : vector<2x32xf32> to vector<2x32xbf16>
    %cst_139 = arith.constant dense<0.000000e+00> : vector<2x128xf32>
    %427 = tpu.matmul %370, %3, %cst_139 {dimension_numbers = #tpu.dot_dimension_numbers<[1], [0], [0], [1], [0, 0, 1, 1], [], []>} : vector<2x32xbf16>, vector<32x128xbf16>, vector<2x128xf32> -> vector<2x128xf32>
    %428 = vector.extract_strided_slice %12 {offsets = [12, 0], sizes = [2, 128], strides = [1, 1]} : vector<16x128xf32> to vector<2x128xf32>
    %429 = arith.addf %428, %427 : vector<2x128xf32>
    %430 = math.tanh %429 : vector<2x128xf32>
    %431 = vector.extract_strided_slice %430 {offsets = [0, 0], sizes = [2, 32], strides = [1, 1]} : vector<2x128xf32> to vector<2x32xf32>
    %cst_140 = arith.constant 1.000000e+00 : f32
    %432 = vector.broadcast %cst_140 : f32 to vector<2x32xf32>
    %433 = arith.addf %431, %432 : vector<2x32xf32>
    %cst_141 = arith.constant 5.000000e-01 : f32
    %434 = vector.broadcast %cst_141 : f32 to vector<2x32xf32>
    %435 = arith.mulf %434, %433 : vector<2x32xf32>
    %436 = vector.extract_strided_slice %430 {offsets = [0, 32], sizes = [2, 32], strides = [1, 1]} : vector<2x128xf32> to vector<2x32xf32>
    %cst_142 = arith.constant 1.000000e+00 : f32
    %437 = vector.broadcast %cst_142 : f32 to vector<2x32xf32>
    %438 = arith.addf %436, %437 : vector<2x32xf32>
    %cst_143 = arith.constant 5.000000e-01 : f32
    %439 = vector.broadcast %cst_143 : f32 to vector<2x32xf32>
    %440 = arith.mulf %439, %438 : vector<2x32xf32>
    %441 = vector.extract_strided_slice %430 {offsets = [0, 64], sizes = [2, 32], strides = [1, 1]} : vector<2x128xf32> to vector<2x32xf32>
    %442 = vector.extract_strided_slice %430 {offsets = [0, 96], sizes = [2, 32], strides = [1, 1]} : vector<2x128xf32> to vector<2x32xf32>
    %cst_144 = arith.constant 1.000000e+00 : f32
    %443 = vector.broadcast %cst_144 : f32 to vector<2x32xf32>
    %444 = arith.addf %442, %443 : vector<2x32xf32>
    %cst_145 = arith.constant 5.000000e-01 : f32
    %445 = vector.broadcast %cst_145 : f32 to vector<2x32xf32>
    %446 = arith.mulf %445, %444 : vector<2x32xf32>
    %447 = arith.mulf %440, %367 : vector<2x32xf32>
    %448 = arith.mulf %435, %441 : vector<2x32xf32>
    %449 = arith.addf %447, %448 : vector<2x32xf32>
    %450 = math.tanh %449 : vector<2x32xf32>
    %451 = arith.mulf %446, %450 : vector<2x32xf32>
    %452 = arith.truncf %451 : vector<2x32xf32> to vector<2x32xbf16>
    %cst_146 = arith.constant dense<0.000000e+00> : vector<2x128xf32>
    %453 = tpu.matmul %398, %4, %cst_146 {dimension_numbers = #tpu.dot_dimension_numbers<[1], [0], [0], [1], [0, 0, 1, 1], [], []>} : vector<2x32xbf16>, vector<32x128xbf16>, vector<2x128xf32> -> vector<2x128xf32>
    %cst_147 = arith.constant dense<0.000000e+00> : vector<2x128xf32>
    %454 = tpu.matmul %370, %1, %cst_147 {dimension_numbers = #tpu.dot_dimension_numbers<[1], [0], [0], [1], [0, 0, 1, 1], [], []>} : vector<2x32xbf16>, vector<32x128xbf16>, vector<2x128xf32> -> vector<2x128xf32>
    %455 = arith.addf %454, %453 : vector<2x128xf32>
    %456 = vector.broadcast %7 : vector<1x128xf32> to vector<2x128xf32>
    %457 = arith.addf %455, %456 : vector<2x128xf32>
    %458 = math.tanh %457 : vector<2x128xf32>
    %459 = vector.extract_strided_slice %458 {offsets = [0, 0], sizes = [2, 32], strides = [1, 1]} : vector<2x128xf32> to vector<2x32xf32>
    %cst_148 = arith.constant 1.000000e+00 : f32
    %460 = vector.broadcast %cst_148 : f32 to vector<2x32xf32>
    %461 = arith.addf %459, %460 : vector<2x32xf32>
    %cst_149 = arith.constant 5.000000e-01 : f32
    %462 = vector.broadcast %cst_149 : f32 to vector<2x32xf32>
    %463 = arith.mulf %462, %461 : vector<2x32xf32>
    %464 = vector.extract_strided_slice %458 {offsets = [0, 32], sizes = [2, 32], strides = [1, 1]} : vector<2x128xf32> to vector<2x32xf32>
    %cst_150 = arith.constant 1.000000e+00 : f32
    %465 = vector.broadcast %cst_150 : f32 to vector<2x32xf32>
    %466 = arith.addf %464, %465 : vector<2x32xf32>
    %cst_151 = arith.constant 5.000000e-01 : f32
    %467 = vector.broadcast %cst_151 : f32 to vector<2x32xf32>
    %468 = arith.mulf %467, %466 : vector<2x32xf32>
    %469 = vector.extract_strided_slice %458 {offsets = [0, 64], sizes = [2, 32], strides = [1, 1]} : vector<2x128xf32> to vector<2x32xf32>
    %470 = vector.extract_strided_slice %458 {offsets = [0, 96], sizes = [2, 32], strides = [1, 1]} : vector<2x128xf32> to vector<2x32xf32>
    %cst_152 = arith.constant 1.000000e+00 : f32
    %471 = vector.broadcast %cst_152 : f32 to vector<2x32xf32>
    %472 = arith.addf %470, %471 : vector<2x32xf32>
    %cst_153 = arith.constant 5.000000e-01 : f32
    %473 = vector.broadcast %cst_153 : f32 to vector<2x32xf32>
    %474 = arith.mulf %473, %472 : vector<2x32xf32>
    %475 = arith.mulf %468, %395 : vector<2x32xf32>
    %476 = arith.mulf %463, %469 : vector<2x32xf32>
    %477 = arith.addf %475, %476 : vector<2x32xf32>
    %478 = math.tanh %477 : vector<2x32xf32>
    %479 = arith.mulf %474, %478 : vector<2x32xf32>
    %480 = arith.truncf %479 : vector<2x32xf32> to vector<2x32xbf16>
    %cst_154 = arith.constant dense<0.000000e+00> : vector<2x128xf32>
    %481 = tpu.matmul %426, %5, %cst_154 {dimension_numbers = #tpu.dot_dimension_numbers<[1], [0], [0], [1], [0, 0, 1, 1], [], []>} : vector<2x32xbf16>, vector<32x128xbf16>, vector<2x128xf32> -> vector<2x128xf32>
    %cst_155 = arith.constant dense<0.000000e+00> : vector<2x128xf32>
    %482 = tpu.matmul %398, %2, %cst_155 {dimension_numbers = #tpu.dot_dimension_numbers<[1], [0], [0], [1], [0, 0, 1, 1], [], []>} : vector<2x32xbf16>, vector<32x128xbf16>, vector<2x128xf32> -> vector<2x128xf32>
    %483 = arith.addf %482, %481 : vector<2x128xf32>
    %484 = vector.broadcast %8 : vector<1x128xf32> to vector<2x128xf32>
    %485 = arith.addf %483, %484 : vector<2x128xf32>
    %486 = math.tanh %485 : vector<2x128xf32>
    %487 = vector.extract_strided_slice %486 {offsets = [0, 0], sizes = [2, 32], strides = [1, 1]} : vector<2x128xf32> to vector<2x32xf32>
    %cst_156 = arith.constant 1.000000e+00 : f32
    %488 = vector.broadcast %cst_156 : f32 to vector<2x32xf32>
    %489 = arith.addf %487, %488 : vector<2x32xf32>
    %cst_157 = arith.constant 5.000000e-01 : f32
    %490 = vector.broadcast %cst_157 : f32 to vector<2x32xf32>
    %491 = arith.mulf %490, %489 : vector<2x32xf32>
    %492 = vector.extract_strided_slice %486 {offsets = [0, 32], sizes = [2, 32], strides = [1, 1]} : vector<2x128xf32> to vector<2x32xf32>
    %cst_158 = arith.constant 1.000000e+00 : f32
    %493 = vector.broadcast %cst_158 : f32 to vector<2x32xf32>
    %494 = arith.addf %492, %493 : vector<2x32xf32>
    %cst_159 = arith.constant 5.000000e-01 : f32
    %495 = vector.broadcast %cst_159 : f32 to vector<2x32xf32>
    %496 = arith.mulf %495, %494 : vector<2x32xf32>
    %497 = vector.extract_strided_slice %486 {offsets = [0, 64], sizes = [2, 32], strides = [1, 1]} : vector<2x128xf32> to vector<2x32xf32>
    %498 = vector.extract_strided_slice %486 {offsets = [0, 96], sizes = [2, 32], strides = [1, 1]} : vector<2x128xf32> to vector<2x32xf32>
    %cst_160 = arith.constant 1.000000e+00 : f32
    %499 = vector.broadcast %cst_160 : f32 to vector<2x32xf32>
    %500 = arith.addf %498, %499 : vector<2x32xf32>
    %cst_161 = arith.constant 5.000000e-01 : f32
    %501 = vector.broadcast %cst_161 : f32 to vector<2x32xf32>
    %502 = arith.mulf %501, %500 : vector<2x32xf32>
    %503 = arith.mulf %496, %423 : vector<2x32xf32>
    %504 = arith.mulf %491, %497 : vector<2x32xf32>
    %505 = arith.addf %503, %504 : vector<2x32xf32>
    %506 = math.tanh %505 : vector<2x32xf32>
    %507 = arith.mulf %502, %506 : vector<2x32xf32>
    %508 = arith.truncf %507 : vector<2x32xf32> to vector<2x32xbf16>
    %cst_162 = arith.constant dense<0.000000e+00> : vector<2x128xf32>
    %509 = tpu.matmul %452, %3, %cst_162 {dimension_numbers = #tpu.dot_dimension_numbers<[1], [0], [0], [1], [0, 0, 1, 1], [], []>} : vector<2x32xbf16>, vector<32x128xbf16>, vector<2x128xf32> -> vector<2x128xf32>
    %510 = vector.extract_strided_slice %12 {offsets = [14, 0], sizes = [2, 128], strides = [1, 1]} : vector<16x128xf32> to vector<2x128xf32>
    %511 = arith.addf %510, %509 : vector<2x128xf32>
    %512 = math.tanh %511 : vector<2x128xf32>
    %513 = vector.extract_strided_slice %512 {offsets = [0, 0], sizes = [2, 32], strides = [1, 1]} : vector<2x128xf32> to vector<2x32xf32>
    %cst_163 = arith.constant 1.000000e+00 : f32
    %514 = vector.broadcast %cst_163 : f32 to vector<2x32xf32>
    %515 = arith.addf %513, %514 : vector<2x32xf32>
    %cst_164 = arith.constant 5.000000e-01 : f32
    %516 = vector.broadcast %cst_164 : f32 to vector<2x32xf32>
    %517 = arith.mulf %516, %515 : vector<2x32xf32>
    %518 = vector.extract_strided_slice %512 {offsets = [0, 32], sizes = [2, 32], strides = [1, 1]} : vector<2x128xf32> to vector<2x32xf32>
    %cst_165 = arith.constant 1.000000e+00 : f32
    %519 = vector.broadcast %cst_165 : f32 to vector<2x32xf32>
    %520 = arith.addf %518, %519 : vector<2x32xf32>
    %cst_166 = arith.constant 5.000000e-01 : f32
    %521 = vector.broadcast %cst_166 : f32 to vector<2x32xf32>
    %522 = arith.mulf %521, %520 : vector<2x32xf32>
    %523 = vector.extract_strided_slice %512 {offsets = [0, 64], sizes = [2, 32], strides = [1, 1]} : vector<2x128xf32> to vector<2x32xf32>
    %524 = vector.extract_strided_slice %512 {offsets = [0, 96], sizes = [2, 32], strides = [1, 1]} : vector<2x128xf32> to vector<2x32xf32>
    %cst_167 = arith.constant 1.000000e+00 : f32
    %525 = vector.broadcast %cst_167 : f32 to vector<2x32xf32>
    %526 = arith.addf %524, %525 : vector<2x32xf32>
    %cst_168 = arith.constant 5.000000e-01 : f32
    %527 = vector.broadcast %cst_168 : f32 to vector<2x32xf32>
    %528 = arith.mulf %527, %526 : vector<2x32xf32>
    %529 = arith.mulf %522, %449 : vector<2x32xf32>
    %530 = arith.mulf %517, %523 : vector<2x32xf32>
    %531 = arith.addf %529, %530 : vector<2x32xf32>
    %532 = math.tanh %531 : vector<2x32xf32>
    %533 = arith.mulf %528, %532 : vector<2x32xf32>
    %534 = arith.truncf %533 : vector<2x32xf32> to vector<2x32xbf16>
    %cst_169 = arith.constant dense<0.000000e+00> : vector<2x128xf32>
    %535 = tpu.matmul %480, %4, %cst_169 {dimension_numbers = #tpu.dot_dimension_numbers<[1], [0], [0], [1], [0, 0, 1, 1], [], []>} : vector<2x32xbf16>, vector<32x128xbf16>, vector<2x128xf32> -> vector<2x128xf32>
    %cst_170 = arith.constant dense<0.000000e+00> : vector<2x128xf32>
    %536 = tpu.matmul %452, %1, %cst_170 {dimension_numbers = #tpu.dot_dimension_numbers<[1], [0], [0], [1], [0, 0, 1, 1], [], []>} : vector<2x32xbf16>, vector<32x128xbf16>, vector<2x128xf32> -> vector<2x128xf32>
    %537 = arith.addf %536, %535 : vector<2x128xf32>
    %538 = vector.broadcast %7 : vector<1x128xf32> to vector<2x128xf32>
    %539 = arith.addf %537, %538 : vector<2x128xf32>
    %540 = math.tanh %539 : vector<2x128xf32>
    %541 = vector.extract_strided_slice %540 {offsets = [0, 0], sizes = [2, 32], strides = [1, 1]} : vector<2x128xf32> to vector<2x32xf32>
    %cst_171 = arith.constant 1.000000e+00 : f32
    %542 = vector.broadcast %cst_171 : f32 to vector<2x32xf32>
    %543 = arith.addf %541, %542 : vector<2x32xf32>
    %cst_172 = arith.constant 5.000000e-01 : f32
    %544 = vector.broadcast %cst_172 : f32 to vector<2x32xf32>
    %545 = arith.mulf %544, %543 : vector<2x32xf32>
    %546 = vector.extract_strided_slice %540 {offsets = [0, 32], sizes = [2, 32], strides = [1, 1]} : vector<2x128xf32> to vector<2x32xf32>
    %cst_173 = arith.constant 1.000000e+00 : f32
    %547 = vector.broadcast %cst_173 : f32 to vector<2x32xf32>
    %548 = arith.addf %546, %547 : vector<2x32xf32>
    %cst_174 = arith.constant 5.000000e-01 : f32
    %549 = vector.broadcast %cst_174 : f32 to vector<2x32xf32>
    %550 = arith.mulf %549, %548 : vector<2x32xf32>
    %551 = vector.extract_strided_slice %540 {offsets = [0, 64], sizes = [2, 32], strides = [1, 1]} : vector<2x128xf32> to vector<2x32xf32>
    %552 = vector.extract_strided_slice %540 {offsets = [0, 96], sizes = [2, 32], strides = [1, 1]} : vector<2x128xf32> to vector<2x32xf32>
    %cst_175 = arith.constant 1.000000e+00 : f32
    %553 = vector.broadcast %cst_175 : f32 to vector<2x32xf32>
    %554 = arith.addf %552, %553 : vector<2x32xf32>
    %cst_176 = arith.constant 5.000000e-01 : f32
    %555 = vector.broadcast %cst_176 : f32 to vector<2x32xf32>
    %556 = arith.mulf %555, %554 : vector<2x32xf32>
    %557 = arith.mulf %550, %477 : vector<2x32xf32>
    %558 = arith.mulf %545, %551 : vector<2x32xf32>
    %559 = arith.addf %557, %558 : vector<2x32xf32>
    %560 = math.tanh %559 : vector<2x32xf32>
    %561 = arith.mulf %556, %560 : vector<2x32xf32>
    %562 = arith.truncf %561 : vector<2x32xf32> to vector<2x32xbf16>
    %cst_177 = arith.constant dense<0.000000e+00> : vector<2x128xf32>
    %563 = tpu.matmul %508, %5, %cst_177 {dimension_numbers = #tpu.dot_dimension_numbers<[1], [0], [0], [1], [0, 0, 1, 1], [], []>} : vector<2x32xbf16>, vector<32x128xbf16>, vector<2x128xf32> -> vector<2x128xf32>
    %cst_178 = arith.constant dense<0.000000e+00> : vector<2x128xf32>
    %564 = tpu.matmul %480, %2, %cst_178 {dimension_numbers = #tpu.dot_dimension_numbers<[1], [0], [0], [1], [0, 0, 1, 1], [], []>} : vector<2x32xbf16>, vector<32x128xbf16>, vector<2x128xf32> -> vector<2x128xf32>
    %565 = arith.addf %564, %563 : vector<2x128xf32>
    %566 = vector.broadcast %8 : vector<1x128xf32> to vector<2x128xf32>
    %567 = arith.addf %565, %566 : vector<2x128xf32>
    %568 = math.tanh %567 : vector<2x128xf32>
    %569 = vector.extract_strided_slice %568 {offsets = [0, 0], sizes = [2, 32], strides = [1, 1]} : vector<2x128xf32> to vector<2x32xf32>
    %cst_179 = arith.constant 1.000000e+00 : f32
    %570 = vector.broadcast %cst_179 : f32 to vector<2x32xf32>
    %571 = arith.addf %569, %570 : vector<2x32xf32>
    %cst_180 = arith.constant 5.000000e-01 : f32
    %572 = vector.broadcast %cst_180 : f32 to vector<2x32xf32>
    %573 = arith.mulf %572, %571 : vector<2x32xf32>
    %574 = vector.extract_strided_slice %568 {offsets = [0, 32], sizes = [2, 32], strides = [1, 1]} : vector<2x128xf32> to vector<2x32xf32>
    %cst_181 = arith.constant 1.000000e+00 : f32
    %575 = vector.broadcast %cst_181 : f32 to vector<2x32xf32>
    %576 = arith.addf %574, %575 : vector<2x32xf32>
    %cst_182 = arith.constant 5.000000e-01 : f32
    %577 = vector.broadcast %cst_182 : f32 to vector<2x32xf32>
    %578 = arith.mulf %577, %576 : vector<2x32xf32>
    %579 = vector.extract_strided_slice %568 {offsets = [0, 64], sizes = [2, 32], strides = [1, 1]} : vector<2x128xf32> to vector<2x32xf32>
    %580 = vector.extract_strided_slice %568 {offsets = [0, 96], sizes = [2, 32], strides = [1, 1]} : vector<2x128xf32> to vector<2x32xf32>
    %cst_183 = arith.constant 1.000000e+00 : f32
    %581 = vector.broadcast %cst_183 : f32 to vector<2x32xf32>
    %582 = arith.addf %580, %581 : vector<2x32xf32>
    %cst_184 = arith.constant 5.000000e-01 : f32
    %583 = vector.broadcast %cst_184 : f32 to vector<2x32xf32>
    %584 = arith.mulf %583, %582 : vector<2x32xf32>
    %585 = arith.mulf %578, %505 : vector<2x32xf32>
    %586 = arith.mulf %573, %579 : vector<2x32xf32>
    %587 = arith.addf %585, %586 : vector<2x32xf32>
    %588 = math.tanh %587 : vector<2x32xf32>
    %589 = arith.mulf %584, %588 : vector<2x32xf32>
    %590 = arith.truncf %589 : vector<2x32xf32> to vector<2x32xbf16>
    %cst_185 = arith.constant dense<0.000000e+00> : vector<2x128xf32>
    %591 = tpu.matmul %562, %4, %cst_185 {dimension_numbers = #tpu.dot_dimension_numbers<[1], [0], [0], [1], [0, 0, 1, 1], [], []>} : vector<2x32xbf16>, vector<32x128xbf16>, vector<2x128xf32> -> vector<2x128xf32>
    %cst_186 = arith.constant dense<0.000000e+00> : vector<2x128xf32>
    %592 = tpu.matmul %534, %1, %cst_186 {dimension_numbers = #tpu.dot_dimension_numbers<[1], [0], [0], [1], [0, 0, 1, 1], [], []>} : vector<2x32xbf16>, vector<32x128xbf16>, vector<2x128xf32> -> vector<2x128xf32>
    %593 = arith.addf %592, %591 : vector<2x128xf32>
    %594 = vector.broadcast %7 : vector<1x128xf32> to vector<2x128xf32>
    %595 = arith.addf %593, %594 : vector<2x128xf32>
    %596 = math.tanh %595 : vector<2x128xf32>
    %597 = vector.extract_strided_slice %596 {offsets = [0, 0], sizes = [2, 32], strides = [1, 1]} : vector<2x128xf32> to vector<2x32xf32>
    %cst_187 = arith.constant 1.000000e+00 : f32
    %598 = vector.broadcast %cst_187 : f32 to vector<2x32xf32>
    %599 = arith.addf %597, %598 : vector<2x32xf32>
    %cst_188 = arith.constant 5.000000e-01 : f32
    %600 = vector.broadcast %cst_188 : f32 to vector<2x32xf32>
    %601 = arith.mulf %600, %599 : vector<2x32xf32>
    %602 = vector.extract_strided_slice %596 {offsets = [0, 32], sizes = [2, 32], strides = [1, 1]} : vector<2x128xf32> to vector<2x32xf32>
    %cst_189 = arith.constant 1.000000e+00 : f32
    %603 = vector.broadcast %cst_189 : f32 to vector<2x32xf32>
    %604 = arith.addf %602, %603 : vector<2x32xf32>
    %cst_190 = arith.constant 5.000000e-01 : f32
    %605 = vector.broadcast %cst_190 : f32 to vector<2x32xf32>
    %606 = arith.mulf %605, %604 : vector<2x32xf32>
    %607 = vector.extract_strided_slice %596 {offsets = [0, 64], sizes = [2, 32], strides = [1, 1]} : vector<2x128xf32> to vector<2x32xf32>
    %608 = vector.extract_strided_slice %596 {offsets = [0, 96], sizes = [2, 32], strides = [1, 1]} : vector<2x128xf32> to vector<2x32xf32>
    %cst_191 = arith.constant 1.000000e+00 : f32
    %609 = vector.broadcast %cst_191 : f32 to vector<2x32xf32>
    %610 = arith.addf %608, %609 : vector<2x32xf32>
    %cst_192 = arith.constant 5.000000e-01 : f32
    %611 = vector.broadcast %cst_192 : f32 to vector<2x32xf32>
    %612 = arith.mulf %611, %610 : vector<2x32xf32>
    %613 = arith.mulf %606, %559 : vector<2x32xf32>
    %614 = arith.mulf %601, %607 : vector<2x32xf32>
    %615 = arith.addf %613, %614 : vector<2x32xf32>
    %616 = math.tanh %615 : vector<2x32xf32>
    %617 = arith.mulf %612, %616 : vector<2x32xf32>
    %618 = arith.truncf %617 : vector<2x32xf32> to vector<2x32xbf16>
    %cst_193 = arith.constant dense<0.000000e+00> : vector<2x128xf32>
    %619 = tpu.matmul %590, %5, %cst_193 {dimension_numbers = #tpu.dot_dimension_numbers<[1], [0], [0], [1], [0, 0, 1, 1], [], []>} : vector<2x32xbf16>, vector<32x128xbf16>, vector<2x128xf32> -> vector<2x128xf32>
    %cst_194 = arith.constant dense<0.000000e+00> : vector<2x128xf32>
    %620 = tpu.matmul %562, %2, %cst_194 {dimension_numbers = #tpu.dot_dimension_numbers<[1], [0], [0], [1], [0, 0, 1, 1], [], []>} : vector<2x32xbf16>, vector<32x128xbf16>, vector<2x128xf32> -> vector<2x128xf32>
    %621 = arith.addf %620, %619 : vector<2x128xf32>
    %622 = vector.broadcast %8 : vector<1x128xf32> to vector<2x128xf32>
    %623 = arith.addf %621, %622 : vector<2x128xf32>
    %624 = math.tanh %623 : vector<2x128xf32>
    %625 = vector.extract_strided_slice %624 {offsets = [0, 0], sizes = [2, 32], strides = [1, 1]} : vector<2x128xf32> to vector<2x32xf32>
    %cst_195 = arith.constant 1.000000e+00 : f32
    %626 = vector.broadcast %cst_195 : f32 to vector<2x32xf32>
    %627 = arith.addf %625, %626 : vector<2x32xf32>
    %cst_196 = arith.constant 5.000000e-01 : f32
    %628 = vector.broadcast %cst_196 : f32 to vector<2x32xf32>
    %629 = arith.mulf %628, %627 : vector<2x32xf32>
    %630 = vector.extract_strided_slice %624 {offsets = [0, 32], sizes = [2, 32], strides = [1, 1]} : vector<2x128xf32> to vector<2x32xf32>
    %cst_197 = arith.constant 1.000000e+00 : f32
    %631 = vector.broadcast %cst_197 : f32 to vector<2x32xf32>
    %632 = arith.addf %630, %631 : vector<2x32xf32>
    %cst_198 = arith.constant 5.000000e-01 : f32
    %633 = vector.broadcast %cst_198 : f32 to vector<2x32xf32>
    %634 = arith.mulf %633, %632 : vector<2x32xf32>
    %635 = vector.extract_strided_slice %624 {offsets = [0, 64], sizes = [2, 32], strides = [1, 1]} : vector<2x128xf32> to vector<2x32xf32>
    %636 = vector.extract_strided_slice %624 {offsets = [0, 96], sizes = [2, 32], strides = [1, 1]} : vector<2x128xf32> to vector<2x32xf32>
    %cst_199 = arith.constant 1.000000e+00 : f32
    %637 = vector.broadcast %cst_199 : f32 to vector<2x32xf32>
    %638 = arith.addf %636, %637 : vector<2x32xf32>
    %cst_200 = arith.constant 5.000000e-01 : f32
    %639 = vector.broadcast %cst_200 : f32 to vector<2x32xf32>
    %640 = arith.mulf %639, %638 : vector<2x32xf32>
    %641 = arith.mulf %634, %587 : vector<2x32xf32>
    %642 = arith.mulf %629, %635 : vector<2x32xf32>
    %643 = arith.addf %641, %642 : vector<2x32xf32>
    %644 = math.tanh %643 : vector<2x32xf32>
    %645 = arith.mulf %640, %644 : vector<2x32xf32>
    %646 = arith.truncf %645 : vector<2x32xf32> to vector<2x32xbf16>
    %cst_201 = arith.constant dense<0.000000e+00> : vector<2x128xf32>
    %647 = tpu.matmul %646, %5, %cst_201 {dimension_numbers = #tpu.dot_dimension_numbers<[1], [0], [0], [1], [0, 0, 1, 1], [], []>} : vector<2x32xbf16>, vector<32x128xbf16>, vector<2x128xf32> -> vector<2x128xf32>
    %cst_202 = arith.constant dense<0.000000e+00> : vector<2x128xf32>
    %648 = tpu.matmul %618, %2, %cst_202 {dimension_numbers = #tpu.dot_dimension_numbers<[1], [0], [0], [1], [0, 0, 1, 1], [], []>} : vector<2x32xbf16>, vector<32x128xbf16>, vector<2x128xf32> -> vector<2x128xf32>
    %649 = arith.addf %648, %647 : vector<2x128xf32>
    %650 = vector.broadcast %8 : vector<1x128xf32> to vector<2x128xf32>
    %651 = arith.addf %649, %650 : vector<2x128xf32>
    %652 = math.tanh %651 : vector<2x128xf32>
    %653 = vector.extract_strided_slice %652 {offsets = [0, 0], sizes = [2, 32], strides = [1, 1]} : vector<2x128xf32> to vector<2x32xf32>
    %cst_203 = arith.constant 1.000000e+00 : f32
    %654 = vector.broadcast %cst_203 : f32 to vector<2x32xf32>
    %655 = arith.addf %653, %654 : vector<2x32xf32>
    %cst_204 = arith.constant 5.000000e-01 : f32
    %656 = vector.broadcast %cst_204 : f32 to vector<2x32xf32>
    %657 = arith.mulf %656, %655 : vector<2x32xf32>
    %658 = vector.extract_strided_slice %652 {offsets = [0, 32], sizes = [2, 32], strides = [1, 1]} : vector<2x128xf32> to vector<2x32xf32>
    %cst_205 = arith.constant 1.000000e+00 : f32
    %659 = vector.broadcast %cst_205 : f32 to vector<2x32xf32>
    %660 = arith.addf %658, %659 : vector<2x32xf32>
    %cst_206 = arith.constant 5.000000e-01 : f32
    %661 = vector.broadcast %cst_206 : f32 to vector<2x32xf32>
    %662 = arith.mulf %661, %660 : vector<2x32xf32>
    %663 = vector.extract_strided_slice %652 {offsets = [0, 64], sizes = [2, 32], strides = [1, 1]} : vector<2x128xf32> to vector<2x32xf32>
    %664 = vector.extract_strided_slice %652 {offsets = [0, 96], sizes = [2, 32], strides = [1, 1]} : vector<2x128xf32> to vector<2x32xf32>
    %cst_207 = arith.constant 1.000000e+00 : f32
    %665 = vector.broadcast %cst_207 : f32 to vector<2x32xf32>
    %666 = arith.addf %664, %665 : vector<2x32xf32>
    %cst_208 = arith.constant 5.000000e-01 : f32
    %667 = vector.broadcast %cst_208 : f32 to vector<2x32xf32>
    %668 = arith.mulf %667, %666 : vector<2x32xf32>
    %669 = arith.mulf %662, %643 : vector<2x32xf32>
    %670 = arith.mulf %657, %663 : vector<2x32xf32>
    %671 = arith.addf %669, %670 : vector<2x32xf32>
    %672 = math.tanh %671 : vector<2x32xf32>
    %673 = arith.mulf %668, %672 : vector<2x32xf32>
    %c0_209 = arith.constant 0 : index
    %c0_210 = arith.constant 0 : index
    %674 = vector.load %arg10[%c0_209, %c0_210] : memref<32x1xf32, #tpu.memory_space<vmem>>, vector<32x1xf32>
    %cst_211 = arith.constant dense<0.000000e+00> : vector<2x1xf32>
    %675 = tpu.matmul %673, %674, %cst_211 {dimension_numbers = #tpu.dot_dimension_numbers<[1], [0], [0], [1], [0, 0, 1, 1], [], []>} : vector<2x32xf32>, vector<32x1xf32>, vector<2x1xf32> -> vector<2x1xf32>
    %c0_212 = arith.constant 0 : index
    %c0_213 = arith.constant 0 : index
    %676 = vector.load %arg11[%c0_212, %c0_213] : memref<1x1xf32, #tpu.memory_space<vmem>>, vector<1x1xf32>
    %677 = vector.broadcast %676 : vector<1x1xf32> to vector<2x1xf32>
    %678 = arith.addf %675, %677 : vector<2x1xf32>
    %c0_214 = arith.constant 0 : index
    %c0_215 = arith.constant 0 : index
    %679 = vector.load %arg12[%c0_214, %c0_215] : memref<2x1xf32, #tpu.memory_space<vmem>>, vector<2x1xf32>
    tpu.vector_store %arg12[%c0_214, %c0_215], %678 {strides = array<i32>} : memref<2x1xf32, #tpu.memory_space<vmem>>, vector<2x1xf32>,
    return
  }
}

</mosaic_0001>

<bundles_post_ra>
// kernel: lstm_forward.1
= control target key start
LH: loop header
LB: loop body
LE: loop exit
PB: predicated region body
PF: predicated region fallthrough
CT: control target
= control target key end

     0   :  { %vm85_vm0 = vcmask 1042432   ;;  %vm86_vm1 = vcmask 1043456   ;;  %v3254_v0 = vmov 0.0   ;;  %v3255_v2 = vmov 65535   ;;  %s3258_s29 = smov 64   ;;  %s3966_s2 = inlined_call_operand.vmem [shape: bf16[32,128], index: 2, kind: input, shape index: {}]   ;;  %s3967_s1 = inlined_call_operand.vmem [shape: bf16[7,128], index: 1, kind: input, shape index: {}]   ;;  %s3968_s0 = inlined_call_operand.vmem [shape: bf16[16,7], index: 0, kind: input, shape index: {}]   ;;  %s3969_s3 = inlined_call_operand.vmem [shape: f32[1,128], index: 3, kind: input, shape index: {}]   ;;  %s3970_s5 = inlined_call_operand.vmem [shape: bf16[32,128], index: 5, kind: input, shape index: {}]   ;;  %s3971_s4 = inlined_call_operand.vmem [shape: bf16[32,128], index: 4, kind: input, shape index: {}]   ;;  %s3972_s6 = inlined_call_operand.vmem [shape: f32[1,128], index: 6, kind: input, shape index: {}]   ;;  %s3973_s8 = inlined_call_operand.vmem [shape: bf16[32,128], index: 8, kind: input, shape index: {}]   ;;  %s3974_s7 = inlined_call_operand.vmem [shape: bf16[32,128], index: 7, kind: input, shape index: {}]   ;;  %s3975_s9 = inlined_call_operand.vmem [shape: f32[1,128], index: 9, kind: input, shape index: {}]   ;;  %s3976_s10 = inlined_call_operand.vmem [shape: f32[32,1], index: 10, kind: input, shape index: {}]   ;;  %s3977_s11 = inlined_call_operand.<no memory space> [shape: f32[1,1], index: 11, kind: input, shape index: {}]   ;;  %s3978_s12 = inlined_call_operand.vmem [shape: f32[2,1], index: 12, kind: output, shape index: {}]  }
   0x1   :  { %2798 = vmatprep.subr.bf16.mxu1 %v3254_v0  ;;  %2792 = vmatprep.subr.bf16.mxu0 %v3254_v0  ;;  %v3330_v1 = vld [vmem:[%s3966_s2 + $0x8] sm:$0xff]   ;;  %v87_v3 = vsel %vm85_vm0, 4294967295, %v3255_v2  ;;  %v44_v4 = vld [vmem:[%s3967_s1] sm:$0xf]  ;;  %vm3256_vm2 = vmmov 0   ;;  %vm81_vm3 = vcmask 56320  }
   0x2   :  { %v88_v5 = vsel %vm86_vm1, %v87_v3, 0  ;;  %2799 = vmatpush3.bf16.msra.mxu1 %v3330_v1  ;;  %2794 = vmatprep.mubr.msk.bf16.mxu0 %vm3256_vm2, %v3254_v0  ;;  %v3136_v7 = vld [vmem:[%s3968_s0] sm:$0xff]   ;;  %v3257_v9 = vmov 0   ;;  %v3378_v31 = vld [vmem:[%s3970_s5 + $0x8] sm:$0xff]   ;;  %vm145_vm4 = vcmask 261120   ;;  %vm2605_vm5 = vcmask 1024  }
   0x3   :  { %v90_v6 = vand.u32 %v88_v5, %v44_v4  ;;  %2800 = vmatprep.subr.bf16.mxu1 %v3254_v0  ;;  %v3345_v8 = vld [vmem:[%s3966_s2] sm:$0xff]   ;;  %2802 = vmatprep.mubr.msk.bf16.mxu1 %vm3256_vm2, %v3254_v0  ;;  %v3400_v36 = vld [vmem:[%s3971_s4 + $0x8] sm:$0xff]  }
   0x4   :  { %v2611_v10 = vld [vmem:[%s3969_s3] ss:$0 sm:$0xff]  ;;  %s3259_s3 = smov 32  }
   0x5   :  { %2793 = vmatpush3.bf16.msra.mxu0 %v90_v6  ;;  %v3385_v32 = vld [vmem:[%s3970_s5] sm:$0xff]  }
   0x6   :  { %2806 = vmatprep.subr.bf16.mxu0 %v3254_v0  ;;  %2801 = vmatpush3.bf16.msra.mxu1 %v3345_v8  ;;  %v3407_v38 = vld [vmem:[%s3971_s4] sm:$0xff]  }
   0x7   :  { %2814 = vmatprep.subr.bf16.mxu1 %v3254_v0  ;;  %v3425_v49 = vld [vmem:[%s3972_s6] ss:$0 sm:$0xff] }
   0x8   :  { %2795 = vmatmul.mubr.msk.bf16.vlgmr.msra.gmra.mxu0 %vm81_vm3, %v3136_v7 }
   0x9   :  { %2807 = vmatpush3.bf16.msra.mxu0 %v3330_v1  ;;  %2810 = vmatprep.mubr.msk.bf16.mxu0 %vm3256_vm2, %v3254_v0 }
   0xa   :  { %2803 = vmatmul.mubr.bf16.vlgmr.msra.gmra.mxu1 %v3257_v9  ;;  %2808 = vmatprep.subr.bf16.mxu0 %v3254_v0 }
   0xb   :  { %2818 = vmatprep.mubr.msk.bf16.mxu1 %vm3256_vm2, %v3254_v0  ;;  %2815 = vmatpush3.bf16.msra.mxu1 %v3378_v31 }
   0xc   :  { %2816 = vmatprep.subr.bf16.mxu1 %v3254_v0 }
   0xd   :  { %2809 = vmatpush3.bf16.msra.mxu0 %v3345_v8 }
   0xe   :  { %2822 = vmatprep.subr.bf16.mxu0 %v3254_v0 }
   0xf   :  { %2817 = vmatpush3.bf16.msra.mxu1 %v3385_v32 }
  0x10   :  { %2830 = vmatprep.subr.bf16.mxu1 %v3254_v0 }
  0x12   :  { %2819 = vmatmul.mubr.bf16.vlgmr.msra.gmra.mxu1 %v3257_v9 }
  0x13   :  { %2831 = vmatpush3.bf16.msra.mxu1 %v3330_v1  ;;  %2834 = vmatprep.mubr.msk.bf16.mxu1 %vm3256_vm2, %v3254_v0 }
  0x14   :  { %2832 = vmatprep.subr.bf16.mxu1 %v3254_v0 }
  0x17   :  { %2833 = vmatpush3.bf16.msra.mxu1 %v3345_v8 }
  0x18   :  { %2846 = vmatprep.subr.bf16.mxu1 %v3254_v0 }
  0xc8   :  { %v126_v11 = vpop.f32.mrf.mxu0 }
  0xc9   :  { %v3364_v12 = vadd.f32 %v2611_v10, %v126_v11 }
  0xca   :  { %v2796_v13 = vpop.f32.mrf.mxu0  ;;  %v183_v14 = vpop.f32.mrf.mxu1 }
  0xcb   :  { %v189_v15 = vadd.f32 %v183_v14, %v3364_v12 }
  0xcc   :  { %v129_v16 = vpop.f32.mrf.mxu0  ;;  %v2804_v17 = vpop.f32.mrf.mxu1 }
  0xcd   :  { %3146 = vtanh.f32 %v189_v15  ;;  %v3367_v18 = vadd.f32 %v2611_v10, %v129_v16 }
  0xce   :  { %v2797_v19 = vpop.f32.mrf.mxu0  ;;  %v186_v20 = vpop.f32.mrf.mxu1 }
  0xd0   :  { %v2805_v21 = vpop.f32.mrf.mxu1 }
  0xd2   :  { %v331_v39 = vpop.f32.mrf.mxu1 }
  0xd4   :  { %v2820_v40 = vpop.f32.mrf.mxu1 }
  0xd6   :  { %v334_v41 = vpop.f32.mrf.mxu1 }
  0xd8   :  { %v2821_v42 = vpop.f32.mrf.mxu1 }
  0xda   :  { %v3147_v22 = vpop.eup %3146 }
  0xdb   :  { %195 = vrot.lane.b32.xlu0 %v3147_v22, %s3258_s29  ;;  %v191_v23 = vadd.f32 1.0, %v3147_v22 }
  0xdd   :  { %v192_v24 = vmul.f32 0.5, %v191_v23 }
  0xdf   :  { %v193_v27 = vmul.f32 0.0, %v192_v24 }
 0x14d   :  { %v196_v25 = vpop.permute.xlu0 %195 }
 0x14e   :  { %v198_v26 = vmul.f32 %v196_v25, %v192_v24  ;;  %v3451_v25 = vld [vmem:[%s3973_s8 + $0x8] sm:$0xff]  }
 0x150   :  { %200 = vrot.lane.b32.xlu0 %v198_v26, %s3259_s3 }
 0x1c2   :  { %v201_v28 = vpop.permute.xlu0 %200 }
 0x1c3   :  { %v3371_v29 = vadd.f32 %v201_v28, %v193_v27  ;;  %v3457_v27 = vld [vmem:[%s3974_s7 + $0x8] sm:$0xff]   ;;  %v3465_v28 = vld [vmem:[%s3973_s8] sm:$0xff]  }
 0x1c5   :  { %3148 = vtanh.f32 %v3371_v29  ;;  %v265_v4 = vrot.slane %v3371_v29, 6  ;;  %v3475_v29 = vld [vmem:[%s3974_s7] sm:$0xff]  }
 0x1d2   :  { %v3149_v30 = vpop.eup %3148 }
 0x1d3   :  { %206 = vrot.lane.b32.xlu1 %v3149_v30, %s3258_s29 }
 0x245   :  { %v207_v33 = vpop.permute.xlu1 %206 }
 0x246   :  { %v209_v34 = vmul.f32 %v207_v33, %v192_v24 }
 0x248   :  { %v210_v35 = vpack.c.bf16 %v209_v34, %v209_v34 }
 0x24a   :  { %212 = vrot.lane.b32.xlu1 %v210_v35, %s3259_s3 }
 0x2bc   :  { %v213_v37 = vpop.permute.xlu1 %212 }
 0x2bd   :  { %2811 = vmatmul.mubr.msk.bf16.vlgmr.msra.gmra.mxu0 %vm145_vm4, %v213_v37 }
 0x2be   :  { %2823 = vmatpush3.bf16.msra.mxu0 %v3400_v36  ;;  %2826 = vmatprep.mubr.msk.bf16.mxu0 %vm3256_vm2, %v3254_v0 }
 0x2bf   :  { %2824 = vmatprep.subr.bf16.mxu0 %v3254_v0 }
 0x2c2   :  { %2825 = vmatpush3.bf16.msra.mxu0 %v3407_v38 }
 0x2c3   :  { %2838 = vmatprep.subr.bf16.mxu0 %v3254_v0 }
 0x2c5   :  { %2827 = vmatmul.mubr.msk.bf16.vlgmr.msra.gmra.mxu0 %vm145_vm4, %v213_v37 }
 0x2c6   :  { %2839 = vmatpush3.bf16.msra.mxu0 %v3378_v31  ;;  %2842 = vmatprep.mubr.msk.bf16.mxu0 %vm3256_vm2, %v3254_v0 }
 0x2c7   :  { %2840 = vmatprep.subr.bf16.mxu0 %v3254_v0 }
 0x2ca   :  { %2841 = vmatpush3.bf16.msra.mxu0 %v3385_v32 }
 0x2cb   :  { %2854 = vmatprep.subr.bf16.mxu0 %v3254_v0 }
 0x37d   :  { %v251_v43 = vpop.f32.mrf.mxu0 }
 0x37e   :  { %v258_v44 = vrot.slane %v251_v43, 6 }
 0x37f   :  { %v2812_v45 = vpop.f32.mrf.mxu0 }
 0x380   :  { %v260_v46 = vadd.f32 %v258_v44, %v3364_v12 }
 0x381   :  { %v254_v47 = vpop.f32.mrf.mxu0 }
 0x382   :  { %3150 = vtanh.f32 %v260_v46 }
 0x383   :  { %v2813_v48 = vpop.f32.mrf.mxu0 }
 0x385   :  { %v383_v50 = vpop.f32.mrf.mxu0 }
 0x386   :  { %v384_v51 = vadd.f32 %v383_v50, %v331_v39 }
 0x387   :  { %v2828_v52 = vpop.f32.mrf.mxu0 }
 0x388   :  { %v395_v53 = vadd.f32 %v3425_v49, %v384_v51  ;;  %v3503_v51 = vld [vmem:[%s3975_s9] ss:$0 sm:$0xff] }
 0x389   :  { %v386_v54 = vpop.f32.mrf.mxu0 }
 0x38a   :  { %3152 = vtanh.f32 %v395_v53 }
 0x38b   :  { %v2829_v55 = vpop.f32.mrf.mxu0 }
 0x38f   :  { %v3151_v56 = vpop.eup %3150 }
 0x390   :  { %269 = vrot.lane.b32.xlu0 %v3151_v56, %s3258_s29  ;;  %v262_v58 = vadd.f32 1.0, %v3151_v56 }
 0x392   :  { %v263_v59 = vmul.f32 0.5, %v262_v58 }
 0x394   :  { %v267_v5 = vmul.f32 %v265_v4, %v263_v59 }
 0x397   :  { %v3153_v57 = vpop.eup %3152 }
 0x398   :  { %401 = vrot.lane.b32.xlu1 %v3153_v57, %s3258_s29  ;;  %v397_v62 = vadd.f32 1.0, %v3153_v57 }
 0x39a   :  { %v398_v63 = vmul.f32 0.5, %v397_v62 }
 0x39c   :  { %v399_v10 = vmul.f32 0.0, %v398_v63 }
 0x402   :  { %v270_v60 = vpop.permute.xlu0 %269 }
 0x403   :  { %v272_v61 = vmul.f32 %v270_v60, %v263_v59 }
 0x405   :  { %274 = vrot.lane.b32.xlu0 %v272_v61, %s3259_s3 }
 0x40a   :  { %v402_v2 = vpop.permute.xlu1 %401 }
 0x40b   :  { %v404_v3 = vmul.f32 %v402_v2, %v398_v63 }
 0x40d   :  { %406 = vrot.lane.b32.xlu1 %v404_v3, %s3259_s3 }
 0x477   :  { %v275_v6 = vpop.permute.xlu0 %274 }
 0x478   :  { %v3433_v7 = vadd.f32 %v275_v6, %v267_v5 }
 0x47a   :  { %3154 = vtanh.f32 %v3433_v7 }
 0x47f   :  { %v407_v11 = vpop.permute.xlu1 %406 }
 0x480   :  { %v3436_v13 = vadd.f32 %v407_v11, %v399_v10 }
 0x482   :  { %3156 = vtanh.f32 %v3436_v13 }
 0x487   :  { %v3155_v14 = vpop.eup %3154 }
 0x488   :  { %280 = vrot.lane.b32.xlu0 %v3155_v14, %s3258_s29 }
 0x48f   :  { %v3157_v15 = vpop.eup %3156 }
 0x490   :  { %412 = vrot.lane.b32.xlu1 %v3157_v15, %s3258_s29 }
 0x4fa   :  { %v281_v16 = vpop.permute.xlu0 %280 }
 0x4fb   :  { %v283_v17 = vmul.f32 %v281_v16, %v263_v59 }
 0x4fd   :  { %v284_v19 = vpack.c.bf16 %v283_v17, %v283_v17 }
 0x4ff   :  { %v418_v20 = vrot.slane %v284_v19, 1 }
 0x501   :  { %419 = vrot.lane.b32.xlu0 %v418_v20, %s3259_s3  ;;  %v472_v20 = vrot.slane %v3433_v7, 6 }
 0x502   :  { %v413_v21 = vpop.permute.xlu1 %412 }
 0x503   :  { %v415_v22 = vmul.f32 %v413_v21, %v398_v63 }
 0x505   :  { %v416_v23 = vpack.c.bf16 %v415_v22, %v415_v22 }
 0x507   :  { %493 = vrot.lane.b32.xlu1 %v416_v23, %s3259_s3 }
 0x573   :  { %v420_v24 = vpop.permute.xlu0 %419 }
 0x574   :  { %2835 = vmatmul.mubr.msk.bf16.vlgmr.msra.gmra.mxu1 %vm145_vm4, %v420_v24 }
 0x575   :  { %2847 = vmatpush3.bf16.msra.mxu1 %v3400_v36  ;;  %2850 = vmatprep.mubr.msk.bf16.mxu1 %vm3256_vm2, %v3254_v0 }
 0x576   :  { %2848 = vmatprep.subr.bf16.mxu1 %v3254_v0 }
 0x579   :  { %2849 = vmatpush3.bf16.msra.mxu1 %v3407_v38  ;;  %v494_v26 = vpop.permute.xlu1 %493 }
 0x57a   :  { %2843 = vmatmul.mubr.msk.bf16.vlgmr.msra.gmra.mxu0 %vm145_vm4, %v494_v26  ;;  %2862 = vmatprep.subr.bf16.mxu1 %v3254_v0 }
 0x57b   :  { %2855 = vmatpush3.bf16.msra.mxu0 %v3451_v25  ;;  %2858 = vmatprep.mubr.msk.bf16.mxu0 %vm3256_vm2, %v3254_v0 }
 0x57c   :  { %2851 = vmatmul.mubr.msk.bf16.vlgmr.msra.gmra.mxu1 %vm145_vm4, %v420_v24  ;;  %2856 = vmatprep.subr.bf16.mxu0 %v3254_v0 }
 0x57d   :  { %2863 = vmatpush3.bf16.msra.mxu1 %v3457_v27  ;;  %2866 = vmatprep.mubr.msk.bf16.mxu1 %vm3256_vm2, %v3254_v0 }
 0x57e   :  { %2864 = vmatprep.subr.bf16.mxu1 %v3254_v0 }
 0x57f   :  { %2857 = vmatpush3.bf16.msra.mxu0 %v3465_v28 }
 0x580   :  { %2870 = vmatprep.subr.bf16.mxu0 %v3254_v0 }
 0x581   :  { %2865 = vmatpush3.bf16.msra.mxu1 %v3475_v29 }
 0x582   :  { %2859 = vmatmul.mubr.bf16.vlgmr.msra.gmra.mxu0 %v3257_v9  ;;  %2878 = vmatprep.subr.bf16.mxu1 %v3254_v0 }
 0x583   :  { %2871 = vmatpush3.bf16.msra.mxu0 %v3330_v1  ;;  %2874 = vmatprep.mubr.msk.bf16.mxu0 %vm3256_vm2, %v3254_v0 }
 0x584   :  { %2867 = vmatmul.mubr.msk.bf16.vlgmr.msra.gmra.mxu1 %vm145_vm4, %v494_v26  ;;  %2872 = vmatprep.subr.bf16.mxu0 %v3254_v0 }
 0x585   :  { %2879 = vmatpush3.bf16.msra.mxu1 %v3378_v31  ;;  %2882 = vmatprep.mubr.msk.bf16.mxu1 %vm3256_vm2, %v3254_v0 }
 0x586   :  { %2880 = vmatprep.subr.bf16.mxu1 %v3254_v0 }
 0x587   :  { %2873 = vmatpush3.bf16.msra.mxu0 %v3345_v8 }
 0x588   :  { %2886 = vmatprep.subr.bf16.mxu0 %v3254_v0 }
 0x589   :  { %2881 = vmatpush3.bf16.msra.mxu1 %v3385_v32 }
 0x58a   :  { %2894 = vmatprep.subr.bf16.mxu1 %v3254_v0 }
 0x634   :  { %v458_v9 = vpop.f32.mrf.mxu1 }
 0x635   :  { %v465_v30 = vrot.slane %v458_v9, 4 }
 0x636   :  { %v2836_v33 = vpop.f32.mrf.mxu1 }
 0x637   :  { %v467_v34 = vadd.f32 %v465_v30, %v3364_v12 }
 0x638   :  { %v461_v35 = vpop.f32.mrf.mxu1 }
 0x639   :  { %3158 = vtanh.f32 %v467_v34 }
 0x63a   :  { %v2837_v37 = vpop.f32.mrf.mxu1  ;;  %v532_v39 = vpop.f32.mrf.mxu0 }
 0x63c   :  { %v2844_v40 = vpop.f32.mrf.mxu0  ;;  %v572_v41 = vpop.f32.mrf.mxu1 }
 0x63d   :  { %v573_v42 = vadd.f32 %v572_v41, %v532_v39 }
 0x63e   :  { %v535_v43 = vpop.f32.mrf.mxu0  ;;  %v2852_v44 = vpop.f32.mrf.mxu1 }
 0x63f   :  { %v578_v45 = vadd.f32 %v3425_v49, %v573_v42 }
 0x640   :  { %v2845_v46 = vpop.f32.mrf.mxu0  ;;  %v575_v47 = vpop.f32.mrf.mxu1 }
 0x641   :  { %3160 = vtanh.f32 %v578_v45 }
 0x642   :  { %v2853_v48 = vpop.f32.mrf.mxu1  ;;  %v646_v50 = vpop.f32.mrf.mxu0 }
 0x644   :  { %v698_v52 = vpop.f32.mrf.mxu1  ;;  %v2860_v53 = vpop.f32.mrf.mxu0 }
 0x645   :  { %v699_v54 = vadd.f32 %v698_v52, %v646_v50 }
 0x646   :  { %v3159_v55 = vpop.eup %3158  ;;  %v2868_v56 = vpop.f32.mrf.mxu1 }
 0x647   :  { %v649_v57 = vpop.f32.mrf.mxu0  ;;  %v710_v58 = vadd.f32 %v3503_v51, %v699_v54  ;;  %476 = vrot.lane.b32.xlu0 %v3159_v55, %s3258_s29  ;;  %v469_v2 = vadd.f32 1.0, %v3159_v55 }
 0x648   :  { %v701_v59 = vpop.f32.mrf.mxu1 }
 0x649   :  { %v2861_v60 = vpop.f32.mrf.mxu0  ;;  %3162 = vtanh.f32 %v710_v58  ;;  %v470_v3 = vmul.f32 0.5, %v469_v2 }
 0x64a   :  { %v2869_v61 = vpop.f32.mrf.mxu1 }
 0x64b   :  { %v474_v21 = vmul.f32 %v472_v20, %v470_v3 }
 0x64e   :  { %v3161_v62 = vpop.eup %3160 }
 0x64f   :  { %584 = vrot.lane.b32.xlu1 %v3161_v62, %s3258_s29  ;;  %v580_v6 = vadd.f32 1.0, %v3161_v62 }
 0x651   :  { %v581_v10 = vmul.f32 0.5, %v580_v6 }
 0x653   :  { %v582_v24 = vmul.f32 %v581_v10, %v3436_v13 }
 0x656   :  { %v3163_v63 = vpop.eup %3162 }
 0x657   :  { %716 = vrot.lane.b32.xlu0 %v3163_v63, %s3258_s29  ;;  %v712_v15 = vadd.f32 1.0, %v3163_v63 }
 0x659   :  { %v713_v16 = vmul.f32 0.5, %v712_v15 }
 0x65b   :  { %v714_v30 = vmul.f32 0.0, %v713_v16 }
 0x6b9   :  { %v477_v4 = vpop.permute.xlu0 %476 }
 0x6ba   :  { %v479_v5 = vmul.f32 %v477_v4, %v470_v3 }
 0x6bc   :  { %481 = vrot.lane.b32.xlu1 %v479_v5, %s3259_s3 }
 0x6c1   :  { %v585_v11 = vpop.permute.xlu1 %584 }
 0x6c2   :  { %v587_v14 = vmul.f32 %v585_v11, %v581_v10 }
 0x6c4   :  { %589 = vrot.lane.b32.xlu0 %v587_v14, %s3259_s3 }
 0x6c9   :  { %v717_v17 = vpop.permute.xlu0 %716 }
 0x6ca   :  { %v719_v19 = vmul.f32 %v717_v17, %v713_v16 }
 0x6cc   :  { %721 = vrot.lane.b32.xlu1 %v719_v19, %s3259_s3 }
 0x72e   :  { %v482_v22 = vpop.permute.xlu1 %481 }
 0x72f   :  { %v3513_v23 = vadd.f32 %v482_v22, %v474_v21 }
 0x731   :  { %3164 = vtanh.f32 %v3513_v23 }
 0x736   :  { %v590_v26 = vpop.permute.xlu0 %589 }
 0x737   :  { %v3517_v9 = vadd.f32 %v590_v26, %v582_v24 }
 0x739   :  { %3166 = vtanh.f32 %v3517_v9 }
 0x73e   :  { %v3165_v33 = vpop.eup %3164  ;;  %v722_v34 = vpop.permute.xlu1 %721 }
 0x73f   :  { %v3520_v35 = vadd.f32 %v722_v34, %v714_v30  ;;  %487 = vrot.lane.b32.xlu0 %v3165_v33, %s3258_s29 }
 0x741   :  { %3168 = vtanh.f32 %v3520_v35 }
 0x746   :  { %v3167_v7 = vpop.eup %3166 }
 0x747   :  { %595 = vrot.lane.b32.xlu1 %v3167_v7, %s3258_s29 }
 0x74e   :  { %v3169_v37 = vpop.eup %3168 }
 0x74f   :  { %727 = vrot.lane.b32.xlu0 %v3169_v37, %s3258_s29 }
 0x7b1   :  { %v488_v13 = vpop.permute.xlu0 %487 }
 0x7b2   :  { %v490_v39 = vmul.f32 %v488_v13, %v470_v3 }
 0x7b4   :  { %v491_v40 = vpack.c.bf16 %v490_v39, %v490_v39 }
 0x7b6   :  { %v733_v41 = vrot.slane %v491_v40, 2 }
 0x7b8   :  { %734 = vrot.lane.b32.xlu1 %v733_v41, %s3259_s3 }
 0x7b9   :  { %v596_v42 = vpop.permute.xlu1 %595 }
 0x7ba   :  { %v598_v43 = vmul.f32 %v596_v42, %v581_v10 }
 0x7bc   :  { %v599_v44 = vpack.c.bf16 %v598_v43, %v598_v43 }
 0x7be   :  { %808 = vrot.lane.b32.xlu0 %v599_v44, %s3259_s3 }
 0x7c1   :  { %v728_v45 = vpop.permute.xlu0 %727 }
 0x7c2   :  { %v730_v46 = vmul.f32 %v728_v45, %v713_v16  ;;  %v787_v45 = vrot.slane %v3513_v23, 6 }
 0x7c4   :  { %v731_v47 = vpack.c.bf16 %v730_v46, %v730_v46 }
 0x7c6   :  { %916 = vrot.lane.b32.xlu1 %v731_v47, %s3259_s3 }
 0x82a   :  { %v735_v48 = vpop.permute.xlu1 %734 }
 0x82b   :  { %2875 = vmatmul.mubr.msk.bf16.vlgmr.msra.gmra.mxu0 %vm145_vm4, %v735_v48 }
 0x82c   :  { %2887 = vmatpush3.bf16.msra.mxu0 %v3400_v36  ;;  %2890 = vmatprep.mubr.msk.bf16.mxu0 %vm3256_vm2, %v3254_v0 }
 0x82d   :  { %2888 = vmatprep.subr.bf16.mxu0 %v3254_v0 }
 0x830   :  { %2889 = vmatpush3.bf16.msra.mxu0 %v3407_v38  ;;  %v809_v50 = vpop.permute.xlu0 %808 }
 0x831   :  { %2883 = vmatmul.mubr.msk.bf16.vlgmr.msra.gmra.mxu1 %vm145_vm4, %v809_v50  ;;  %2902 = vmatprep.subr.bf16.mxu0 %v3254_v0 }
 0x832   :  { %2895 = vmatpush3.bf16.msra.mxu1 %v3451_v25  ;;  %2898 = vmatprep.mubr.msk.bf16.mxu1 %vm3256_vm2, %v3254_v0 }
 0x833   :  { %2891 = vmatmul.mubr.msk.bf16.vlgmr.msra.gmra.mxu0 %vm145_vm4, %v735_v48  ;;  %2896 = vmatprep.subr.bf16.mxu1 %v3254_v0 }
 0x834   :  { %2903 = vmatpush3.bf16.msra.mxu0 %v3457_v27  ;;  %2906 = vmatprep.mubr.msk.bf16.mxu0 %vm3256_vm2, %v3254_v0 }
 0x835   :  { %2904 = vmatprep.subr.bf16.mxu0 %v3254_v0 }
 0x836   :  { %2897 = vmatpush3.bf16.msra.mxu1 %v3465_v28 }
 0x837   :  { %2910 = vmatprep.subr.bf16.mxu1 %v3254_v0 }
 0x838   :  { %2905 = vmatpush3.bf16.msra.mxu0 %v3475_v29  ;;  %v917_v52 = vpop.permute.xlu1 %916 }
 0x839   :  { %2899 = vmatmul.mubr.msk.bf16.vlgmr.msra.gmra.mxu1 %vm145_vm4, %v917_v52  ;;  %2918 = vmatprep.subr.bf16.mxu0 %v3254_v0 }
 0x83a   :  { %2911 = vmatpush3.bf16.msra.mxu1 %v3330_v1  ;;  %2914 = vmatprep.mubr.msk.bf16.mxu1 %vm3256_vm2, %v3254_v0 }
 0x83b   :  { %2907 = vmatmul.mubr.msk.bf16.vlgmr.msra.gmra.mxu0 %vm145_vm4, %v809_v50  ;;  %2912 = vmatprep.subr.bf16.mxu1 %v3254_v0 }
 0x83c   :  { %2919 = vmatpush3.bf16.msra.mxu0 %v3378_v31  ;;  %2922 = vmatprep.mubr.msk.bf16.mxu0 %vm3256_vm2, %v3254_v0 }
 0x83d   :  { %2920 = vmatprep.subr.bf16.mxu0 %v3254_v0 }
 0x83e   :  { %2913 = vmatpush3.bf16.msra.mxu1 %v3345_v8 }
 0x83f   :  { %2926 = vmatprep.subr.bf16.mxu1 %v3254_v0 }
 0x840   :  { %2921 = vmatpush3.bf16.msra.mxu0 %v3385_v32 }
 0x841   :  { %2934 = vmatprep.subr.bf16.mxu0 %v3254_v0 }
 0x8eb   :  { %v773_v53 = vpop.f32.mrf.mxu0 }
 0x8ec   :  { %v780_v54 = vrot.slane %v773_v53, 2 }
 0x8ed   :  { %v2876_v55 = vpop.f32.mrf.mxu0 }
 0x8ee   :  { %v782_v56 = vadd.f32 %v780_v54, %v3364_v12 }
 0x8ef   :  { %v776_v57 = vpop.f32.mrf.mxu0 }
 0x8f0   :  { %3170 = vtanh.f32 %v782_v56 }
 0x8f1   :  { %v2877_v58 = vpop.f32.mrf.mxu0  ;;  %v847_v59 = vpop.f32.mrf.mxu1 }
 0x8f3   :  { %v2884_v60 = vpop.f32.mrf.mxu1  ;;  %v887_v61 = vpop.f32.mrf.mxu0 }
 0x8f4   :  { %v888_v62 = vadd.f32 %v887_v61, %v847_v59 }
 0x8f5   :  { %v850_v63 = vpop.f32.mrf.mxu1  ;;  %v2892_v2 = vpop.f32.mrf.mxu0 }
 0x8f6   :  { %v893_v3 = vadd.f32 %v3425_v49, %v888_v62 }
 0x8f7   :  { %v2885_v4 = vpop.f32.mrf.mxu1  ;;  %v890_v5 = vpop.f32.mrf.mxu0 }
 0x8f8   :  { %3172 = vtanh.f32 %v893_v3 }
 0x8f9   :  { %v2893_v6 = vpop.f32.mrf.mxu0  ;;  %v955_v10 = vpop.f32.mrf.mxu1 }
 0x8fb   :  { %v2900_v11 = vpop.f32.mrf.mxu1  ;;  %v995_v14 = vpop.f32.mrf.mxu0 }
 0x8fc   :  { %v996_v15 = vadd.f32 %v995_v14, %v955_v10 }
 0x8fd   :  { %v3171_v12 = vpop.eup %3170  ;;  %v958_v16 = vpop.f32.mrf.mxu1 }
 0x8fe   :  { %v2908_v17 = vpop.f32.mrf.mxu0  ;;  %v1001_v19 = vadd.f32 %v3503_v51, %v996_v15  ;;  %791 = vrot.lane.b32.xlu0 %v3171_v12, %s3258_s29  ;;  %v784_v30 = vadd.f32 1.0, %v3171_v12 }
 0x8ff   :  { %v2901_v20 = vpop.f32.mrf.mxu1 }
 0x900   :  { %v998_v21 = vpop.f32.mrf.mxu0  ;;  %3174 = vtanh.f32 %v1001_v19  ;;  %v785_v33 = vmul.f32 0.5, %v784_v30 }
 0x902   :  { %v2909_v22 = vpop.f32.mrf.mxu0  ;;  %v789_v46 = vmul.f32 %v787_v45, %v785_v33 }
 0x905   :  { %v3173_v24 = vpop.eup %3172 }
 0x906   :  { %899 = vrot.lane.b32.xlu1 %v3173_v24, %s3258_s29  ;;  %v895_v37 = vadd.f32 1.0, %v3173_v24 }
 0x908   :  { %v896_v13 = vmul.f32 0.5, %v895_v37 }
 0x90a   :  { %v897_v50 = vmul.f32 %v896_v13, %v3517_v9 }
 0x90d   :  { %v3175_v26 = vpop.eup %3174 }
 0x90e   :  { %1007 = vrot.lane.b32.xlu0 %v3175_v26, %s3258_s29  ;;  %v1003_v41 = vadd.f32 1.0, %v3175_v26 }
 0x910   :  { %v1004_v42 = vmul.f32 0.5, %v1003_v41 }
 0x912   :  { %v1005_v54 = vmul.f32 %v1004_v42, %v3520_v35 }
 0x970   :  { %v792_v34 = vpop.permute.xlu0 %791 }
 0x971   :  { %v794_v7 = vmul.f32 %v792_v34, %v785_v33 }
 0x973   :  { %796 = vrot.lane.b32.xlu1 %v794_v7, %s3259_s3 }
 0x978   :  { %v900_v39 = vpop.permute.xlu1 %899 }
 0x979   :  { %v902_v40 = vmul.f32 %v900_v39, %v896_v13 }
 0x97b   :  { %904 = vrot.lane.b32.xlu0 %v902_v40, %s3259_s3 }
 0x980   :  { %v1008_v43 = vpop.permute.xlu0 %1007 }
 0x981   :  { %v1010_v44 = vmul.f32 %v1008_v43, %v1004_v42 }
 0x983   :  { %1012 = vrot.lane.b32.xlu1 %v1010_v44, %s3259_s3 }
 0x9e5   :  { %v797_v47 = vpop.permute.xlu1 %796 }
 0x9e6   :  { %v3574_v48 = vadd.f32 %v797_v47, %v789_v46 }
 0x9e8   :  { %3176 = vtanh.f32 %v3574_v48 }
 0x9ed   :  { %v905_v52 = vpop.permute.xlu0 %904 }
 0x9ee   :  { %v3578_v53 = vadd.f32 %v905_v52, %v897_v50 }
 0x9f0   :  { %3178 = vtanh.f32 %v3578_v53 }
 0x9f5   :  { %v3177_v55 = vpop.eup %3176  ;;  %v1013_v56 = vpop.permute.xlu1 %1012 }
 0x9f6   :  { %v3582_v57 = vadd.f32 %v1013_v56, %v1005_v54  ;;  %802 = vrot.lane.b32.xlu0 %v3177_v55, %s3258_s29 }
 0x9f8   :  { %3180 = vtanh.f32 %v3582_v57 }
 0x9fd   :  { %v3179_v23 = vpop.eup %3178 }
 0x9fe   :  { %910 = vrot.lane.b32.xlu1 %v3179_v23, %s3258_s29 }
 0xa05   :  { %v3181_v58 = vpop.eup %3180 }
 0xa06   :  { %1018 = vrot.lane.b32.xlu0 %v3181_v58, %s3258_s29 }
 0xa68   :  { %v803_v9 = vpop.permute.xlu0 %802 }
 0xa69   :  { %v805_v59 = vmul.f32 %v803_v9, %v785_v33 }
 0xa6b   :  { %v806_v60 = vpack.c.bf16 %v805_v59, %v805_v59 }
 0xa6d   :  { %v1024_v61 = vrot.slane %v806_v60, 3 }
 0xa6f   :  { %1025 = vrot.lane.b32.xlu1 %v1024_v61, %s3259_s3 }
 0xa70   :  { %v911_v35 = vpop.permute.xlu1 %910 }
 0xa71   :  { %v913_v62 = vmul.f32 %v911_v35, %v896_v13  ;;  %v1075_v35 = vrot.slane %v3574_v48, 6 }
 0xa73   :  { %v914_v63 = vpack.c.bf16 %v913_v62, %v913_v62 }
 0xa75   :  { %1096 = vrot.lane.b32.xlu0 %v914_v63, %s3259_s3 }
 0xa78   :  { %v1019_v2 = vpop.permute.xlu0 %1018 }
 0xa79   :  { %v1021_v3 = vmul.f32 %v1019_v2, %v1004_v42 }
 0xa7b   :  { %v1022_v4 = vpack.c.bf16 %v1021_v3, %v1021_v3 }
 0xa7d   :  { %1204 = vrot.lane.b32.xlu1 %v1022_v4, %s3259_s3 }
 0xae1   :  { %v1026_v5 = vpop.permute.xlu1 %1025 }
 0xae2   :  { %2915 = vmatmul.mubr.msk.bf16.vlgmr.msra.gmra.mxu1 %vm145_vm4, %v1026_v5 }
 0xae3   :  { %2927 = vmatpush3.bf16.msra.mxu1 %v3400_v36  ;;  %2930 = vmatprep.mubr.msk.bf16.mxu1 %vm3256_vm2, %v3254_v0 }
 0xae4   :  { %2928 = vmatprep.subr.bf16.mxu1 %v3254_v0 }
 0xae7   :  { %2929 = vmatpush3.bf16.msra.mxu1 %v3407_v38  ;;  %v1097_v6 = vpop.permute.xlu0 %1096 }
 0xae8   :  { %2923 = vmatmul.mubr.msk.bf16.vlgmr.msra.gmra.mxu0 %vm145_vm4, %v1097_v6  ;;  %2942 = vmatprep.subr.bf16.mxu1 %v3254_v0 }
 0xae9   :  { %2935 = vmatpush3.bf16.msra.mxu0 %v3451_v25  ;;  %2938 = vmatprep.mubr.msk.bf16.mxu0 %vm3256_vm2, %v3254_v0 }
 0xaea   :  { %2931 = vmatmul.mubr.msk.bf16.vlgmr.msra.gmra.mxu1 %vm145_vm4, %v1026_v5  ;;  %2936 = vmatprep.subr.bf16.mxu0 %v3254_v0 }
 0xaeb   :  { %2943 = vmatpush3.bf16.msra.mxu1 %v3457_v27  ;;  %2946 = vmatprep.mubr.msk.bf16.mxu1 %vm3256_vm2, %v3254_v0 }
 0xaec   :  { %2944 = vmatprep.subr.bf16.mxu1 %v3254_v0 }
 0xaed   :  { %2937 = vmatpush3.bf16.msra.mxu0 %v3465_v28 }
 0xaee   :  { %2950 = vmatprep.subr.bf16.mxu0 %v3254_v0 }
 0xaef   :  { %2945 = vmatpush3.bf16.msra.mxu1 %v3475_v29  ;;  %v1205_v10 = vpop.permute.xlu1 %1204 }
 0xaf0   :  { %2939 = vmatmul.mubr.msk.bf16.vlgmr.msra.gmra.mxu0 %vm145_vm4, %v1205_v10  ;;  %2958 = vmatprep.subr.bf16.mxu1 %v3254_v0 }
 0xaf1   :  { %2951 = vmatpush3.bf16.msra.mxu0 %v3330_v1  ;;  %2954 = vmatprep.mubr.msk.bf16.mxu0 %vm3256_vm2, %v3254_v0 }
 0xaf2   :  { %2947 = vmatmul.mubr.msk.bf16.vlgmr.msra.gmra.mxu1 %vm145_vm4, %v1097_v6  ;;  %2952 = vmatprep.subr.bf16.mxu0 %v3254_v0 }
 0xaf3   :  { %2959 = vmatpush3.bf16.msra.mxu1 %v3378_v31  ;;  %2962 = vmatprep.mubr.msk.bf16.mxu1 %vm3256_vm2, %v3254_v0 }
 0xaf4   :  { %2960 = vmatprep.subr.bf16.mxu1 %v3254_v0 }
 0xaf5   :  { %2953 = vmatpush3.bf16.msra.mxu0 %v3345_v8 }
 0xaf6   :  { %2966 = vmatprep.subr.bf16.mxu0 %v3254_v0 }
 0xaf7   :  { %2961 = vmatpush3.bf16.msra.mxu1 %v3385_v32 }
 0xaf8   :  { %2974 = vmatprep.subr.bf16.mxu1 %v3254_v0 }
 0xba2   :  { %v1064_v1 = vpop.f32.mrf.mxu1 }
 0xba3   :  { %v1070_v11 = vadd.f32 %v1064_v1, %v3367_v18 }
 0xba4   :  { %v2916_v14 = vpop.f32.mrf.mxu1 }
 0xba5   :  { %3182 = vtanh.f32 %v1070_v11 }
 0xba6   :  { %v1067_v15 = vpop.f32.mrf.mxu1 }
 0xba8   :  { %v2917_v12 = vpop.f32.mrf.mxu1  ;;  %v1135_v16 = vpop.f32.mrf.mxu0 }
 0xbaa   :  { %v2924_v17 = vpop.f32.mrf.mxu0  ;;  %v1175_v19 = vpop.f32.mrf.mxu1 }
 0xbab   :  { %v1176_v20 = vadd.f32 %v1175_v19, %v1135_v16 }
 0xbac   :  { %v1138_v21 = vpop.f32.mrf.mxu0  ;;  %v2932_v22 = vpop.f32.mrf.mxu1 }
 0xbad   :  { %v1181_v8 = vadd.f32 %v3425_v49, %v1176_v20 }
 0xbae   :  { %v2925_v24 = vpop.f32.mrf.mxu0  ;;  %v1178_v26 = vpop.f32.mrf.mxu1 }
 0xbaf   :  { %3184 = vtanh.f32 %v1181_v8 }
 0xbb0   :  { %v2933_v30 = vpop.f32.mrf.mxu1  ;;  %v1243_v33 = vpop.f32.mrf.mxu0 }
 0xbb2   :  { %v3183_v34 = vpop.eup %3182  ;;  %v2940_v7 = vpop.f32.mrf.mxu0 }
 0xbb3   :  { %v1283_v37 = vpop.f32.mrf.mxu1  ;;  %1079 = vrot.lane.b32.xlu0 %v3183_v34, %s3258_s29  ;;  %v1072_v47 = vadd.f32 1.0, %v3183_v34 }
 0xbb4   :  { %v1284_v13 = vadd.f32 %v1283_v37, %v1243_v33  ;;  %v1246_v39 = vpop.f32.mrf.mxu0 }
 0xbb5   :  { %v2948_v40 = vpop.f32.mrf.mxu1  ;;  %v1073_v50 = vmul.f32 0.5, %v1072_v47 }
 0xbb6   :  { %v1289_v41 = vadd.f32 %v3503_v51, %v1284_v13  ;;  %v2941_v42 = vpop.f32.mrf.mxu0 }
 0xbb7   :  { %v1286_v43 = vpop.f32.mrf.mxu1  ;;  %v1077_v62 = vmul.f32 %v1075_v35, %v1073_v50 }
 0xbb8   :  { %3186 = vtanh.f32 %v1289_v41 }
 0xbb9   :  { %v2949_v44 = vpop.f32.mrf.mxu1 }
 0xbbc   :  { %v3185_v45 = vpop.eup %3184 }
 0xbbd   :  { %1187 = vrot.lane.b32.xlu1 %v3185_v45, %s3258_s29  ;;  %v1183_v55 = vadd.f32 1.0, %v3185_v45 }
 0xbbf   :  { %v1184_v56 = vmul.f32 0.5, %v1183_v55 }
 0xbc1   :  { %v1185_v3 = vmul.f32 %v1184_v56, %v3578_v53 }
 0xbc5   :  { %v3187_v46 = vpop.eup %3186 }
 0xbc6   :  { %1295 = vrot.lane.b32.xlu0 %v3187_v46, %s3258_s29  ;;  %v1291_v9 = vadd.f32 1.0, %v3187_v46 }
 0xbc8   :  { %v1292_v59 = vmul.f32 0.5, %v1291_v9 }
 0xbca   :  { %v1293_v10 = vmul.f32 %v1292_v59, %v3582_v57 }
 0xc25   :  { %v1080_v52 = vpop.permute.xlu0 %1079 }
 0xc26   :  { %v1082_v54 = vmul.f32 %v1080_v52, %v1073_v50 }
 0xc28   :  { %1084 = vrot.lane.b32.xlu1 %v1082_v54, %s3259_s3 }
 0xc2f   :  { %v1188_v23 = vpop.permute.xlu1 %1187 }
 0xc30   :  { %v1190_v58 = vmul.f32 %v1188_v23, %v1184_v56 }
 0xc32   :  { %1192 = vrot.lane.b32.xlu0 %v1190_v58, %s3259_s3 }
 0xc38   :  { %v1296_v60 = vpop.permute.xlu0 %1295 }
 0xc39   :  { %v1298_v61 = vmul.f32 %v1296_v60, %v1292_v59 }
 0xc3b   :  { %1300 = vrot.lane.b32.xlu1 %v1298_v61, %s3259_s3 }
 0xc9a   :  { %v1085_v63 = vpop.permute.xlu1 %1084 }
 0xc9b   :  { %v3636_v2 = vadd.f32 %v1085_v63, %v1077_v62 }
 0xc9d   :  { %3188 = vtanh.f32 %v3636_v2 }
 0xca4   :  { %v1193_v4 = vpop.permute.xlu0 %1192 }
 0xca5   :  { %v3640_v5 = vadd.f32 %v1193_v4, %v1185_v3 }
 0xca7   :  { %3190 = vtanh.f32 %v3640_v5 }
 0xcaa   :  { %v3189_v6 = vpop.eup %3188 }
 0xcab   :  { %1090 = vrot.lane.b32.xlu0 %v3189_v6, %s3258_s29 }
 0xcad   :  { %v1301_v1 = vpop.permute.xlu1 %1300 }
 0xcae   :  { %v3645_v48 = vadd.f32 %v1301_v1, %v1293_v10 }
 0xcb0   :  { %3192 = vtanh.f32 %v3645_v48 }
 0xcb4   :  { %v3191_v11 = vpop.eup %3190 }
 0xcb5   :  { %1198 = vrot.lane.b32.xlu1 %v3191_v11, %s3258_s29 }
 0xcbd   :  { %v3193_v14 = vpop.eup %3192 }
 0xcbe   :  { %1306 = vrot.lane.b32.xlu0 %v3193_v14, %s3258_s29 }
 0xd1d   :  { %v1091_v53 = vpop.permute.xlu0 %1090 }
 0xd1e   :  { %v1093_v15 = vmul.f32 %v1091_v53, %v1073_v50 }
 0xd20   :  { %v1094_v12 = vpack.c.bf16 %v1093_v15, %v1093_v15  ;;  %v1365_v15 = vrot.slane %v3636_v2, 6 }
 0xd22   :  { %1312 = vrot.lane.b32.xlu1 %v1094_v12, %s3259_s3 }
 0xd27   :  { %v1199_v16 = vpop.permute.xlu1 %1198 }
 0xd28   :  { %v1201_v17 = vmul.f32 %v1199_v16, %v1184_v56 }
 0xd2a   :  { %v1202_v19 = vpack.c.bf16 %v1201_v17, %v1201_v17 }
 0xd2c   :  { %1386 = vrot.lane.b32.xlu0 %v1202_v19, %s3259_s3 }
 0xd30   :  { %v1307_v57 = vpop.permute.xlu0 %1306 }
 0xd31   :  { %v1309_v20 = vmul.f32 %v1307_v57, %v1292_v59 }
 0xd33   :  { %v1310_v21 = vpack.c.bf16 %v1309_v20, %v1309_v20 }
 0xd35   :  { %1494 = vrot.lane.b32.xlu1 %v1310_v21, %s3259_s3 }
 0xd94   :  { %v1313_v22 = vpop.permute.xlu1 %1312 }
 0xd95   :  { %2955 = vmatmul.mubr.msk.bf16.vlgmr.msra.gmra.mxu0 %vm145_vm4, %v1313_v22 }
 0xd96   :  { %2967 = vmatpush3.bf16.msra.mxu0 %v3400_v36  ;;  %2970 = vmatprep.mubr.msk.bf16.mxu0 %vm3256_vm2, %v3254_v0 }
 0xd97   :  { %2968 = vmatprep.subr.bf16.mxu0 %v3254_v0 }
 0xd9a   :  { %2969 = vmatpush3.bf16.msra.mxu0 %v3407_v38  ;;  %v3683_v38 = vld [vmem:[%s3966_s2 + $0x8] sm:$0xff]  }
 0xd9b   :  { %2982 = vmatprep.subr.bf16.mxu0 %v3254_v0 }
 0xd9d   :  { %2971 = vmatmul.mubr.msk.bf16.vlgmr.msra.gmra.mxu0 %vm145_vm4, %v1313_v22 }
 0xd9e   :  { %2983 = vmatpush3.bf16.msra.mxu0 %v3457_v27  ;;  %v1387_v8 = vpop.permute.xlu0 %1386  ;;  %2986 = vmatprep.mubr.msk.bf16.mxu0 %vm3256_vm2, %v3254_v0 }
 0xd9f   :  { %2963 = vmatmul.mubr.msk.bf16.vlgmr.msra.gmra.mxu1 %vm145_vm4, %v1387_v8  ;;  %2984 = vmatprep.subr.bf16.mxu0 %v3254_v0 }
 0xda0   :  { %2975 = vmatpush3.bf16.msra.mxu1 %v3451_v25  ;;  %2978 = vmatprep.mubr.msk.bf16.mxu1 %vm3256_vm2, %v3254_v0 }
 0xda1   :  { %2976 = vmatprep.subr.bf16.mxu1 %v3254_v0 }
 0xda2   :  { %2985 = vmatpush3.bf16.msra.mxu0 %v3475_v29 }
 0xda3   :  { %2998 = vmatprep.subr.bf16.mxu0 %v3254_v0 }
 0xda4   :  { %2977 = vmatpush3.bf16.msra.mxu1 %v3465_v28 }
 0xda5   :  { %2987 = vmatmul.mubr.msk.bf16.vlgmr.msra.gmra.mxu0 %vm145_vm4, %v1387_v8  ;;  %2990 = vmatprep.subr.bf16.mxu1 %v3254_v0 }
 0xda6   :  { %2999 = vmatpush3.bf16.msra.mxu0 %v3378_v31  ;;  %3002 = vmatprep.mubr.msk.bf16.mxu0 %vm3256_vm2, %v3254_v0  ;;  %v3694_v31 = vld [vmem:[%s3966_s2] sm:$0xff]  }
 0xda7   :  { %v1495_v36 = vpop.permute.xlu1 %1494  ;;  %3000 = vmatprep.subr.bf16.mxu0 %v3254_v0 }
 0xda8   :  { %2979 = vmatmul.mubr.msk.bf16.vlgmr.msra.gmra.mxu1 %vm145_vm4, %v1495_v36 }
 0xda9   :  { %2991 = vmatpush3.bf16.msra.mxu1 %v3683_v38  ;;  %2994 = vmatprep.mubr.msk.bf16.mxu1 %vm3256_vm2, %v3254_v0 }
 0xdaa   :  { %2992 = vmatprep.subr.bf16.mxu1 %v3254_v0  ;;  %3001 = vmatpush3.bf16.msra.mxu0 %v3385_v32 }
 0xdab   :  { %3014 = vmatprep.subr.bf16.mxu0 %v3254_v0 }
 0xdad   :  { %2993 = vmatpush3.bf16.msra.mxu1 %v3694_v31 }
 0xdae   :  { %3006 = vmatprep.subr.bf16.mxu1 %v3254_v0 }
 0xe55   :  { %v1351_v24 = vpop.f32.mrf.mxu0 }
 0xe56   :  { %v1358_v26 = vrot.slane %v1351_v24, 6 }
 0xe57   :  { %v2956_v30 = vpop.f32.mrf.mxu0 }
 0xe58   :  { %v1360_v33 = vadd.f32 %v1358_v26, %v3367_v18 }
 0xe59   :  { %v1354_v34 = vpop.f32.mrf.mxu0 }
 0xe5a   :  { %3194 = vtanh.f32 %v1360_v33 }
 0xe5b   :  { %v2957_v7 = vpop.f32.mrf.mxu0 }
 0xe5d   :  { %v1465_v32 = vpop.f32.mrf.mxu0 }
 0xe5f   :  { %v1425_v37 = vpop.f32.mrf.mxu1  ;;  %v2972_v13 = vpop.f32.mrf.mxu0 }
 0xe60   :  { %v1466_v39 = vadd.f32 %v1465_v32, %v1425_v37 }
 0xe61   :  { %v2964_v40 = vpop.f32.mrf.mxu1  ;;  %v1468_v41 = vpop.f32.mrf.mxu0 }
 0xe62   :  { %v1471_v42 = vadd.f32 %v3425_v49, %v1466_v39  ;;  %v3729_v40 = vld [vmem:[%s3971_s4 + $0x8] sm:$0xff]   ;;  %v3738_v41 = vld [vmem:[%s3971_s4] sm:$0xff]  }
 0xe63   :  { %v1428_v43 = vpop.f32.mrf.mxu1  ;;  %v2973_v44 = vpop.f32.mrf.mxu0 }
 0xe64   :  { %3196 = vtanh.f32 %v1471_v42 }
 0xe65   :  { %v2965_v45 = vpop.f32.mrf.mxu1  ;;  %v1573_v46 = vpop.f32.mrf.mxu0 }
 0xe67   :  { %v3195_v47 = vpop.eup %3194  ;;  %v2988_v52 = vpop.f32.mrf.mxu0 }
 0xe68   :  { %v1533_v50 = vpop.f32.mrf.mxu1  ;;  %1369 = vrot.lane.b32.xlu0 %v3195_v47, %s3258_s29  ;;  %v1362_v61 = vadd.f32 1.0, %v3195_v47 }
 0xe69   :  { %v1574_v54 = vadd.f32 %v1573_v46, %v1533_v50  ;;  %v1576_v56 = vpop.f32.mrf.mxu0 }
 0xe6a   :  { %v2980_v55 = vpop.f32.mrf.mxu1  ;;  %v1363_v35 = vmul.f32 0.5, %v1362_v61 }
 0xe6b   :  { %v1579_v23 = vadd.f32 %v3503_v51, %v1574_v54  ;;  %v2989_v9 = vpop.f32.mrf.mxu0  ;;  %v3784_v55 = vld [vmem:[%s3972_s6] ss:$0 sm:$0xff] }
 0xe6c   :  { %v1536_v58 = vpop.f32.mrf.mxu1  ;;  %v1367_v12 = vmul.f32 %v1365_v15, %v1363_v35 }
 0xe6d   :  { %3198 = vtanh.f32 %v1579_v23 }
 0xe6e   :  { %v2981_v59 = vpop.f32.mrf.mxu1 }
 0xe71   :  { %v3197_v49 = vpop.eup %3196 }
 0xe72   :  { %1477 = vrot.lane.b32.xlu1 %v3197_v49, %s3258_s29  ;;  %v1473_v3 = vadd.f32 1.0, %v3197_v49 }
 0xe74   :  { %v1474_v4 = vmul.f32 0.5, %v1473_v3 }
 0xe76   :  { %v1475_v19 = vmul.f32 %v1474_v4, %v3640_v5 }
 0xe7a   :  { %v3199_v60 = vpop.eup %3198 }
 0xe7b   :  { %1585 = vrot.lane.b32.xlu0 %v3199_v60, %s3258_s29  ;;  %v1581_v1 = vadd.f32 1.0, %v3199_v60 }
 0xe7d   :  { %v1582_v11 = vmul.f32 0.5, %v1581_v1 }
 0xe7f   :  { %v1583_v22 = vmul.f32 %v1582_v11, %v3645_v48 }
 0xeda   :  { %v1370_v62 = vpop.permute.xlu0 %1369 }
 0xedb   :  { %v1372_v63 = vmul.f32 %v1370_v62, %v1363_v35 }
 0xedd   :  { %1374 = vrot.lane.b32.xlu1 %v1372_v63, %s3259_s3 }
 0xee4   :  { %v1478_v6 = vpop.permute.xlu1 %1477 }
 0xee5   :  { %v1480_v10 = vmul.f32 %v1478_v6, %v1474_v4 }
 0xee7   :  { %1482 = vrot.lane.b32.xlu0 %v1480_v10, %s3259_s3 }
 0xeed   :  { %v1586_v14 = vpop.permute.xlu0 %1585 }
 0xeee   :  { %v1588_v53 = vmul.f32 %v1586_v14, %v1582_v11 }
 0xef0   :  { %1590 = vrot.lane.b32.xlu1 %v1588_v53, %s3259_s3 }
 0xf4f   :  { %v1375_v16 = vpop.permute.xlu1 %1374 }
 0xf50   :  { %v3708_v17 = vadd.f32 %v1375_v16, %v1367_v12 }
 0xf52   :  { %3200 = vtanh.f32 %v3708_v17 }
 0xf59   :  { %v1483_v57 = vpop.permute.xlu0 %1482 }
 0xf5a   :  { %v3712_v20 = vadd.f32 %v1483_v57, %v1475_v19 }
 0xf5c   :  { %3202 = vtanh.f32 %v3712_v20 }
 0xf5f   :  { %v3201_v21 = vpop.eup %3200 }
 0xf60   :  { %1380 = vrot.lane.b32.xlu0 %v3201_v21, %s3258_s29 }
 0xf62   :  { %v1591_v8 = vpop.permute.xlu1 %1590 }
 0xf63   :  { %v3717_v2 = vadd.f32 %v1591_v8, %v1583_v22 }
 0xf65   :  { %3204 = vtanh.f32 %v3717_v2 }
 0xf69   :  { %v3203_v36 = vpop.eup %3202 }
 0xf6a   :  { %1488 = vrot.lane.b32.xlu1 %v3203_v36, %s3258_s29 }
 0xf72   :  { %v3205_v24 = vpop.eup %3204 }
 0xf73   :  { %1596 = vrot.lane.b32.xlu0 %v3205_v24, %s3258_s29 }
 0xfd2   :  { %v1381_v5 = vpop.permute.xlu0 %1380 }
 0xfd3   :  { %v1383_v26 = vmul.f32 %v1381_v5, %v1363_v35  ;;  %v1656_v5 = vrot.slane %v3708_v17, 6 }
 0xfd5   :  { %v1384_v30 = vpack.c.bf16 %v1383_v26, %v1383_v26 }
 0xfd7   :  { %v1602_v33 = vrot.slane %v1384_v30, 1 }
 0xfd9   :  { %1603 = vrot.lane.b32.xlu1 %v1602_v33, %s3259_s3 }
 0xfdc   :  { %v1489_v34 = vpop.permute.xlu1 %1488 }
 0xfdd   :  { %v1491_v7 = vmul.f32 %v1489_v34, %v1474_v4 }
 0xfdf   :  { %v1492_v48 = vpack.c.bf16 %v1491_v7, %v1491_v7 }
 0xfe1   :  { %1677 = vrot.lane.b32.xlu0 %v1492_v48, %s3259_s3 }
 0xfe5   :  { %v1597_v32 = vpop.permute.xlu0 %1596 }
 0xfe6   :  { %v1599_v37 = vmul.f32 %v1597_v32, %v1582_v11 }
 0xfe8   :  { %v1600_v13 = vpack.c.bf16 %v1599_v37, %v1599_v37 }
 0xfea   :  { %1785 = vrot.lane.b32.xlu1 %v1600_v13, %s3259_s3 }
0x104b   :  { %v1604_v39 = vpop.permute.xlu1 %1603 }
0x104c   :  { %2995 = vmatmul.mubr.msk.bf16.vlgmr.msra.gmra.mxu1 %vm145_vm4, %v1604_v39 }
0x104d   :  { %3007 = vmatpush3.bf16.msra.mxu1 %v3729_v40  ;;  %3010 = vmatprep.mubr.msk.bf16.mxu1 %vm3256_vm2, %v3254_v0 }
0x104e   :  { %3008 = vmatprep.subr.bf16.mxu1 %v3254_v0 }
0x1051   :  { %3009 = vmatpush3.bf16.msra.mxu1 %v3738_v41 }
0x1052   :  { %3022 = vmatprep.subr.bf16.mxu1 %v3254_v0 }
0x1053   :  { %v1678_v42 = vpop.permute.xlu0 %1677 }
0x1054   :  { %3003 = vmatmul.mubr.msk.bf16.vlgmr.msra.gmra.mxu0 %vm145_vm4, %v1678_v42  ;;  %3011 = vmatmul.mubr.msk.bf16.vlgmr.msra.gmra.mxu1 %vm145_vm4, %v1604_v39 }
0x1055   :  { %3015 = vmatpush3.bf16.msra.mxu0 %v3451_v25  ;;  %3023 = vmatpush3.bf16.msra.mxu1 %v3457_v27  ;;  %v3765_v27 = vld [vmem:[%s3970_s5 + $0x8] sm:$0xff]  }
0x1056   :  { %3016 = vmatprep.subr.bf16.mxu0 %v3254_v0  ;;  %3024 = vmatprep.subr.bf16.mxu1 %v3254_v0 }
0x1057   :  { %3026 = vmatprep.mubr.msk.bf16.mxu1 %vm3256_vm2, %v3254_v0  ;;  %3018 = vmatprep.mubr.msk.bf16.mxu0 %vm3256_vm2, %v3254_v0 }
0x1059   :  { %3017 = vmatpush3.bf16.msra.mxu0 %v3465_v28  ;;  %3025 = vmatpush3.bf16.msra.mxu1 %v3475_v29  ;;  %v3776_v28 = vld [vmem:[%s3970_s5] sm:$0xff]  }
0x105a   :  { %3030 = vmatprep.subr.bf16.mxu0 %v3254_v0  ;;  %3038 = vmatprep.subr.bf16.mxu1 %v3254_v0 }
0x105c   :  { %v1786_v25 = vpop.permute.xlu1 %1785  ;;  %3027 = vmatmul.mubr.msk.bf16.vlgmr.msra.gmra.mxu1 %vm145_vm4, %v1678_v42 }
0x105d   :  { %3019 = vmatmul.mubr.msk.bf16.vlgmr.msra.gmra.mxu0 %vm145_vm4, %v1786_v25  ;;  %3039 = vmatpush3.bf16.msra.mxu1 %v3765_v27 }
0x105e   :  { %3031 = vmatpush3.bf16.msra.mxu0 %v3683_v38  ;;  %3034 = vmatprep.mubr.msk.bf16.mxu0 %vm3256_vm2, %v3254_v0 }
0x105f   :  { %3032 = vmatprep.subr.bf16.mxu0 %v3254_v0  ;;  %3040 = vmatprep.subr.bf16.mxu1 %v3254_v0 }
0x1060   :  { %3042 = vmatprep.mubr.msk.bf16.mxu1 %vm3256_vm2, %v3254_v0 }
0x1061   :  { %3041 = vmatpush3.bf16.msra.mxu1 %v3776_v28 }
0x1062   :  { %3033 = vmatpush3.bf16.msra.mxu0 %v3694_v31  ;;  %3054 = vmatprep.subr.bf16.mxu1 %v3254_v0 }
0x1063   :  { %3046 = vmatprep.subr.bf16.mxu0 %v3254_v0 }
0x110c   :  { %v1642_v29 = vpop.f32.mrf.mxu1 }
0x110d   :  { %v1649_v38 = vrot.slane %v1642_v29, 4 }
0x110e   :  { %v2996_v43 = vpop.f32.mrf.mxu1 }
0x110f   :  { %v1651_v44 = vadd.f32 %v1649_v38, %v3367_v18 }
0x1110   :  { %v1645_v45 = vpop.f32.mrf.mxu1 }
0x1111   :  { %3206 = vtanh.f32 %v1651_v44 }
0x1112   :  { %v2997_v46 = vpop.f32.mrf.mxu1 }
0x1114   :  { %v1716_v31 = vpop.f32.mrf.mxu0  ;;  %v1756_v47 = vpop.f32.mrf.mxu1 }
0x1115   :  { %v1757_v50 = vadd.f32 %v1756_v47, %v1716_v31 }
0x1116   :  { %v3004_v52 = vpop.f32.mrf.mxu0  ;;  %v3012_v54 = vpop.f32.mrf.mxu1 }
0x1117   :  { %v1762_v56 = vadd.f32 %v3784_v55, %v1757_v50  ;;  %v3823_v52 = vld [vmem:[%s3973_s8 + $0x8] sm:$0xff]  }
0x1118   :  { %v1719_v23 = vpop.f32.mrf.mxu0  ;;  %v1759_v58 = vpop.f32.mrf.mxu1  ;;  %v3833_v54 = vld [vmem:[%s3974_s7 + $0x8] sm:$0xff]  }
0x1119   :  { %3208 = vtanh.f32 %v1762_v56  ;;  %v3842_v56 = vld [vmem:[%s3973_s8] sm:$0xff]  }
0x111a   :  { %v3005_v9 = vpop.f32.mrf.mxu0  ;;  %v3013_v59 = vpop.f32.mrf.mxu1  ;;  %v3849_v23 = vld [vmem:[%s3974_s7] sm:$0xff]  }
0x111c   :  { %v1864_v60 = vpop.f32.mrf.mxu1 }
0x111d   :  { %v1824_v49 = vpop.f32.mrf.mxu0 }
0x111e   :  { %v1865_v61 = vadd.f32 %v1864_v60, %v1824_v49  ;;  %v3207_v35 = vpop.eup %3206  ;;  %v3028_v63 = vpop.f32.mrf.mxu1 }
0x111f   :  { %v3020_v62 = vpop.f32.mrf.mxu0  ;;  %1660 = vrot.lane.b32.xlu0 %v3207_v35, %s3258_s29  ;;  %v1653_v53 = vadd.f32 1.0, %v3207_v35 }
0x1120   :  { %v1870_v3 = vadd.f32 %v3503_v51, %v1865_v61  ;;  %v1867_v6 = vpop.f32.mrf.mxu1 }
0x1121   :  { %v1827_v4 = vpop.f32.mrf.mxu0  ;;  %v1654_v15 = vmul.f32 0.5, %v1653_v53 }
0x1122   :  { %3210 = vtanh.f32 %v1870_v3  ;;  %v3029_v1 = vpop.f32.mrf.mxu1 }
0x1123   :  { %v3021_v10 = vpop.f32.mrf.mxu0  ;;  %v1658_v26 = vmul.f32 %v1656_v5, %v1654_v15 }
0x1126   :  { %v3209_v11 = vpop.eup %3208 }
0x1127   :  { %1768 = vrot.lane.b32.xlu1 %v3209_v11, %s3258_s29  ;;  %v1764_v51 = vadd.f32 1.0, %v3209_v11 }
0x1129   :  { %v1765_v19 = vmul.f32 0.5, %v1764_v51 }
0x112b   :  { %v1766_v34 = vmul.f32 %v1765_v19, %v3712_v20 }
0x112f   :  { %v3211_v14 = vpop.eup %3210 }
0x1130   :  { %1876 = vrot.lane.b32.xlu0 %v3211_v14, %s3258_s29  ;;  %v1872_v22 = vadd.f32 1.0, %v3211_v14 }
0x1132   :  { %v1873_v8 = vmul.f32 0.5, %v1872_v22 }
0x1134   :  { %v1874_v32 = vmul.f32 %v1873_v8, %v3717_v2 }
0x1191   :  { %v1661_v12 = vpop.permute.xlu0 %1660 }
0x1192   :  { %v1663_v16 = vmul.f32 %v1661_v12, %v1654_v15 }
0x1194   :  { %1665 = vrot.lane.b32.xlu1 %v1663_v16, %s3259_s3  ;;  %v3872_v16 = vld [vmem:[%s3975_s9] ss:$0 sm:$0xff] }
0x1199   :  { %v1769_v57 = vpop.permute.xlu1 %1768 }
0x119a   :  { %v1771_v21 = vmul.f32 %v1769_v57, %v1765_v19 }
0x119c   :  { %1773 = vrot.lane.b32.xlu0 %v1771_v21, %s3259_s3 }
0x11a2   :  { %v1877_v36 = vpop.permute.xlu0 %1876 }
0x11a3   :  { %v1879_v24 = vmul.f32 %v1877_v36, %v1873_v8 }
0x11a5   :  { %1881 = vrot.lane.b32.xlu1 %v1879_v24, %s3259_s3 }
0x1206   :  { %v1666_v30 = vpop.permute.xlu1 %1665 }
0x1207   :  { %v3795_v33 = vadd.f32 %v1666_v30, %v1658_v26 }
0x1209   :  { %3212 = vtanh.f32 %v3795_v33 }
0x120e   :  { %v1774_v7 = vpop.permute.xlu0 %1773 }
0x120f   :  { %v3799_v48 = vadd.f32 %v1774_v7, %v1766_v34 }
0x1211   :  { %3214 = vtanh.f32 %v3799_v48 }
0x1216   :  { %v3213_v37 = vpop.eup %3212 }
0x1217   :  { %v1882_v13 = vpop.permute.xlu1 %1881  ;;  %1671 = vrot.lane.b32.xlu0 %v3213_v37, %s3258_s29 }
0x1218   :  { %v3803_v39 = vadd.f32 %v1882_v13, %v1874_v32 }
0x121a   :  { %3216 = vtanh.f32 %v3803_v39 }
0x121e   :  { %v3215_v17 = vpop.eup %3214 }
0x121f   :  { %1779 = vrot.lane.b32.xlu1 %v3215_v17, %s3258_s29 }
0x1227   :  { %v3217_v42 = vpop.eup %3216 }
0x1228   :  { %1887 = vrot.lane.b32.xlu0 %v3217_v42, %s3258_s29 }
0x1289   :  { %v1672_v20 = vpop.permute.xlu0 %1671 }
0x128a   :  { %v1674_v25 = vmul.f32 %v1672_v20, %v1654_v15  ;;  %v1947_v20 = vrot.slane %v3795_v33, 6 }
0x128c   :  { %v1675_v29 = vpack.c.bf16 %v1674_v25, %v1674_v25 }
0x128e   :  { %v1893_v38 = vrot.slane %v1675_v29, 2 }
0x1290   :  { %1894 = vrot.lane.b32.xlu1 %v1893_v38, %s3259_s3 }
0x1291   :  { %v1780_v2 = vpop.permute.xlu1 %1779 }
0x1292   :  { %v1782_v43 = vmul.f32 %v1780_v2, %v1765_v19 }
0x1294   :  { %v1783_v44 = vpack.c.bf16 %v1782_v43, %v1782_v43 }
0x1296   :  { %1968 = vrot.lane.b32.xlu0 %v1783_v44, %s3259_s3 }
0x129a   :  { %v1888_v45 = vpop.permute.xlu0 %1887 }
0x129b   :  { %v1890_v46 = vmul.f32 %v1888_v45, %v1873_v8 }
0x129d   :  { %v1891_v31 = vpack.c.bf16 %v1890_v46, %v1890_v46 }
0x129f   :  { %2076 = vrot.lane.b32.xlu1 %v1891_v31, %s3259_s3 }
0x1302   :  { %v1895_v47 = vpop.permute.xlu1 %1894 }
0x1303   :  { %3035 = vmatmul.mubr.msk.bf16.vlgmr.msra.gmra.mxu0 %vm145_vm4, %v1895_v47 }
0x1304   :  { %3047 = vmatpush3.bf16.msra.mxu0 %v3729_v40  ;;  %3050 = vmatprep.mubr.msk.bf16.mxu0 %vm3256_vm2, %v3254_v0 }
0x1305   :  { %3048 = vmatprep.subr.bf16.mxu0 %v3254_v0 }
0x1308   :  { %3049 = vmatpush3.bf16.msra.mxu0 %v3738_v41  ;;  %v1969_v50 = vpop.permute.xlu0 %1968 }
0x1309   :  { %3043 = vmatmul.mubr.msk.bf16.vlgmr.msra.gmra.mxu1 %vm145_vm4, %v1969_v50  ;;  %3062 = vmatprep.subr.bf16.mxu0 %v3254_v0 }
0x130a   :  { %3055 = vmatpush3.bf16.msra.mxu1 %v3823_v52  ;;  %3058 = vmatprep.mubr.msk.bf16.mxu1 %vm3256_vm2, %v3254_v0 }
0x130b   :  { %3051 = vmatmul.mubr.msk.bf16.vlgmr.msra.gmra.mxu0 %vm145_vm4, %v1895_v47  ;;  %3056 = vmatprep.subr.bf16.mxu1 %v3254_v0 }
0x130c   :  { %3063 = vmatpush3.bf16.msra.mxu0 %v3833_v54  ;;  %3066 = vmatprep.mubr.msk.bf16.mxu0 %vm3256_vm2, %v3254_v0 }
0x130d   :  { %3064 = vmatprep.subr.bf16.mxu0 %v3254_v0 }
0x130e   :  { %3057 = vmatpush3.bf16.msra.mxu1 %v3842_v56 }
0x130f   :  { %3070 = vmatprep.subr.bf16.mxu1 %v3254_v0 }
0x1310   :  { %3065 = vmatpush3.bf16.msra.mxu0 %v3849_v23 }
0x1311   :  { %v2077_v58 = vpop.permute.xlu1 %2076  ;;  %3078 = vmatprep.subr.bf16.mxu0 %v3254_v0 }
0x1312   :  { %3059 = vmatmul.mubr.msk.bf16.vlgmr.msra.gmra.mxu1 %vm145_vm4, %v2077_v58 }
0x1313   :  { %3071 = vmatpush3.bf16.msra.mxu1 %v3765_v27  ;;  %3074 = vmatprep.mubr.msk.bf16.mxu1 %vm3256_vm2, %v3254_v0 }
0x1314   :  { %3067 = vmatmul.mubr.msk.bf16.vlgmr.msra.gmra.mxu0 %vm145_vm4, %v1969_v50  ;;  %3072 = vmatprep.subr.bf16.mxu1 %v3254_v0 }
0x1315   :  { %3079 = vmatpush3.bf16.msra.mxu0 %v3729_v40  ;;  %3082 = vmatprep.mubr.msk.bf16.mxu0 %vm3256_vm2, %v3254_v0 }
0x1316   :  { %3080 = vmatprep.subr.bf16.mxu0 %v3254_v0 }
0x1317   :  { %3073 = vmatpush3.bf16.msra.mxu1 %v3776_v28 }
0x1318   :  { %3086 = vmatprep.subr.bf16.mxu1 %v3254_v0 }
0x1319   :  { %3081 = vmatpush3.bf16.msra.mxu0 %v3738_v41 }
0x131a   :  { %3094 = vmatprep.subr.bf16.mxu0 %v3254_v0 }
0x13c3   :  { %v1933_v27 = vpop.f32.mrf.mxu0 }
0x13c4   :  { %v1940_v9 = vrot.slane %v1933_v27, 2 }
0x13c5   :  { %v3036_v59 = vpop.f32.mrf.mxu0 }
0x13c6   :  { %v1942_v49 = vadd.f32 %v1940_v9, %v3367_v18 }
0x13c7   :  { %v1936_v60 = vpop.f32.mrf.mxu0 }
0x13c8   :  { %3218 = vtanh.f32 %v1942_v49 }
0x13c9   :  { %v3037_v40 = vpop.f32.mrf.mxu0  ;;  %v2007_v61 = vpop.f32.mrf.mxu1 }
0x13cb   :  { %v3044_v35 = vpop.f32.mrf.mxu1  ;;  %v2047_v62 = vpop.f32.mrf.mxu0 }
0x13cc   :  { %v2048_v63 = vadd.f32 %v2047_v62, %v2007_v61 }
0x13cd   :  { %v2010_v3 = vpop.f32.mrf.mxu1  ;;  %v3052_v28 = vpop.f32.mrf.mxu0 }
0x13ce   :  { %v2053_v4 = vadd.f32 %v3784_v55, %v2048_v63 }
0x13cf   :  { %v3045_v6 = vpop.f32.mrf.mxu1  ;;  %v2050_v41 = vpop.f32.mrf.mxu0 }
0x13d0   :  { %3220 = vtanh.f32 %v2053_v4 }
0x13d1   :  { %v3053_v10 = vpop.f32.mrf.mxu0 }
0x13d2   :  { %v2115_v1 = vpop.f32.mrf.mxu1 }
0x13d4   :  { %v3060_v11 = vpop.f32.mrf.mxu1  ;;  %v2155_v14 = vpop.f32.mrf.mxu0 }
0x13d5   :  { %v2156_v53 = vadd.f32 %v2155_v14, %v2115_v1  ;;  %v3219_v18 = vpop.eup %3218 }
0x13d6   :  { %v2118_v15 = vpop.f32.mrf.mxu1  ;;  %v3068_v12 = vpop.f32.mrf.mxu0  ;;  %1951 = vrot.lane.b32.xlu0 %v3219_v18, %s3258_s29  ;;  %v1944_v36 = vadd.f32 1.0, %v3219_v18 }
0x13d7   :  { %v2161_v51 = vadd.f32 %v3872_v16, %v2156_v53 }
0x13d8   :  { %v3061_v19 = vpop.f32.mrf.mxu1  ;;  %v2158_v57 = vpop.f32.mrf.mxu0  ;;  %v1945_v24 = vmul.f32 0.5, %v1944_v36 }
0x13d9   :  { %3222 = vtanh.f32 %v2161_v51 }
0x13da   :  { %v3069_v21 = vpop.f32.mrf.mxu0  ;;  %v1949_v25 = vmul.f32 %v1947_v20, %v1945_v24 }
0x13dd   :  { %v3221_v22 = vpop.eup %3220 }
0x13de   :  { %2059 = vrot.lane.b32.xlu1 %v3221_v22, %s3258_s29  ;;  %v2055_v30 = vadd.f32 1.0, %v3221_v22 }
0x13e0   :  { %v2056_v34 = vmul.f32 0.5, %v2055_v30 }
0x13e2   :  { %v2057_v2 = vmul.f32 %v2056_v34, %v3799_v48 }
0x13e6   :  { %v3223_v8 = vpop.eup %3222 }
0x13e7   :  { %2167 = vrot.lane.b32.xlu0 %v3223_v8, %s3258_s29  ;;  %v2163_v37 = vadd.f32 1.0, %v3223_v8 }
0x13e9   :  { %v2164_v13 = vmul.f32 0.5, %v2163_v37 }
0x13eb   :  { %v2165_v45 = vmul.f32 %v2164_v13, %v3803_v39 }
0x1448   :  { %v1952_v5 = vpop.permute.xlu0 %1951 }
0x1449   :  { %v1954_v26 = vmul.f32 %v1952_v5, %v1945_v24 }
0x144b   :  { %1956 = vrot.lane.b32.xlu1 %v1954_v26, %s3259_s3 }
0x1450   :  { %v2060_v7 = vpop.permute.xlu1 %2059 }
0x1451   :  { %v2062_v32 = vmul.f32 %v2060_v7, %v2056_v34 }
0x1453   :  { %2064 = vrot.lane.b32.xlu0 %v2062_v32, %s3259_s3 }
0x1459   :  { %v2168_v17 = vpop.permute.xlu0 %2167 }
0x145a   :  { %v2170_v42 = vmul.f32 %v2168_v17, %v2164_v13 }
0x145c   :  { %2172 = vrot.lane.b32.xlu1 %v2170_v42, %s3259_s3 }
0x14bd   :  { %v1957_v29 = vpop.permute.xlu1 %1956 }
0x14be   :  { %v1959_v38 = vadd.f32 %v1957_v29, %v1949_v25 }
0x14c0   :  { %3224 = vtanh.f32 %v1959_v38 }
0x14c5   :  { %v2065_v43 = vpop.permute.xlu0 %2064 }
0x14c6   :  { %v3883_v44 = vadd.f32 %v2065_v43, %v2057_v2 }
0x14c8   :  { %3226 = vtanh.f32 %v3883_v44 }
0x14cd   :  { %v3225_v46 = vpop.eup %3224 }
0x14ce   :  { %v2173_v31 = vpop.permute.xlu1 %2172  ;;  %1962 = vrot.lane.b32.xlu0 %v3225_v46, %s3258_s29 }
0x14cf   :  { %v3887_v47 = vadd.f32 %v2173_v31, %v2165_v45 }
0x14d1   :  { %3228 = vtanh.f32 %v3887_v47 }
0x14d5   :  { %v3227_v33 = vpop.eup %3226 }
0x14d6   :  { %2070 = vrot.lane.b32.xlu1 %v3227_v33, %s3258_s29 }
0x14de   :  { %v3229_v50 = vpop.eup %3228 }
0x14df   :  { %2178 = vrot.lane.b32.xlu0 %v3229_v50, %s3258_s29 }
0x1540   :  { %v1963_v48 = vpop.permute.xlu0 %1962 }
0x1541   :  { %v1965_v58 = vmul.f32 %v1963_v48, %v1945_v24 }
0x1543   :  { %v1966_v27 = vpack.c.bf16 %v1965_v58, %v1965_v58 }
0x1545   :  { %v2230_v9 = vrot.slane %v1966_v27, 3 }
0x1547   :  { %2231 = vrot.lane.b32.xlu0 %v2230_v9, %s3259_s3 }
0x1548   :  { %v2071_v39 = vpop.permute.xlu1 %2070 }
0x1549   :  { %v2073_v59 = vmul.f32 %v2071_v39, %v2056_v34 }
0x154b   :  { %v2074_v49 = vpack.c.bf16 %v2073_v59, %v2073_v59 }
0x154d   :  { %2184 = vrot.lane.b32.xlu1 %v2074_v49, %s3259_s3 }
0x1551   :  { %v2179_v60 = vpop.permute.xlu0 %2178 }
0x1552   :  { %v2181_v40 = vmul.f32 %v2179_v60, %v2164_v13 }
0x1554   :  { %v2182_v61 = vpack.c.bf16 %v2181_v40, %v2181_v40 }
0x1556   :  { %2299 = vrot.lane.b32.xlu1 %v2182_v61, %s3259_s3 }
0x15b9   :  { %v2232_v35 = vpop.permute.xlu0 %2231 }
0x15ba   :  { %3083 = vmatmul.mubr.msk.bf16.vlgmr.msra.gmra.mxu0 %vm145_vm4, %v2232_v35 }
0x15bb   :  { %3095 = vmatpush3.bf16.msra.mxu0 %v3833_v54  ;;  %3098 = vmatprep.mubr.msk.bf16.mxu0 %vm3256_vm2, %v3254_v0 }
0x15bc   :  { %3096 = vmatprep.subr.bf16.mxu0 %v3254_v0 }
0x15bf   :  { %v2185_v62 = vpop.permute.xlu1 %2184  ;;  %3097 = vmatpush3.bf16.msra.mxu0 %v3849_v23 }
0x15c0   :  { %3075 = vmatmul.mubr.msk.bf16.vlgmr.msra.gmra.mxu1 %vm145_vm4, %v2185_v62  ;;  %3110 = vmatprep.subr.bf16.mxu0 %v3254_v0 }
0x15c1   :  { %3087 = vmatpush3.bf16.msra.mxu1 %v3823_v52  ;;  %3090 = vmatprep.mubr.msk.bf16.mxu1 %vm3256_vm2, %v3254_v0 }
0x15c2   :  { %3099 = vmatmul.mubr.msk.bf16.vlgmr.msra.gmra.mxu0 %vm145_vm4, %v2185_v62  ;;  %3088 = vmatprep.subr.bf16.mxu1 %v3254_v0 }
0x15c3   :  { %3111 = vmatpush3.bf16.msra.mxu0 %v3833_v54  ;;  %3114 = vmatprep.mubr.msk.bf16.mxu0 %vm3256_vm2, %v3254_v0 }
0x15c4   :  { %3112 = vmatprep.subr.bf16.mxu0 %v3254_v0 }
0x15c5   :  { %3089 = vmatpush3.bf16.msra.mxu1 %v3842_v56 }
0x15c6   :  { %3102 = vmatprep.subr.bf16.mxu1 %v3254_v0 }
0x15c7   :  { %3113 = vmatpush3.bf16.msra.mxu0 %v3849_v23 }
0x15c8   :  { %v2300_v63 = vpop.permute.xlu1 %2299 }
0x15c9   :  { %3091 = vmatmul.mubr.msk.bf16.vlgmr.msra.gmra.mxu1 %vm145_vm4, %v2300_v63 }
0x15ca   :  { %3103 = vmatpush3.bf16.msra.mxu1 %v3823_v52  ;;  %3106 = vmatprep.mubr.msk.bf16.mxu1 %vm3256_vm2, %v3254_v0 }
0x15cb   :  { %3104 = vmatprep.subr.bf16.mxu1 %v3254_v0 }
0x15ce   :  { %3105 = vmatpush3.bf16.msra.mxu1 %v3842_v56 }
0x15cf   :  { %3118 = vmatprep.subr.mxu1 %v3254_v0 }
0x167a   :  { %v2270_v54 = vpop.f32.mrf.mxu0 }
0x167c   :  { %v3084_v3 = vpop.f32.mrf.mxu0 }
0x167e   :  { %v2273_v28 = vpop.f32.mrf.mxu0 }
0x167f   :  { %v2521_v28 = vld [vmem:[%s3976_s10 + $0x10] sm:$0xff] }
0x1680   :  { %v2223_v4 = vpop.f32.mrf.mxu1  ;;  %v3085_v6 = vpop.f32.mrf.mxu0 }
0x1681   :  { %v2271_v41 = vadd.f32 %v2270_v54, %v2223_v4  ;;  %v2520_v4 = vld [vmem:[%s3976_s10 + $0x8] sm:$0xff]  ;;  %v2519_v6 = vld [vmem:[%s3976_s10] sm:$0xff] }
0x1682   :  { %v3076_v23 = vpop.f32.mrf.mxu1  ;;  %v2378_v10 = vpop.f32.mrf.mxu0 }
0x1683   :  { %v2276_v1 = vadd.f32 %v3784_v55, %v2271_v41  ;;  %v17_v23 = vstv %s3977_s11 }
0x1684   :  { %v2226_v52 = vpop.f32.mrf.mxu1  ;;  %v3100_v11 = vpop.f32.mrf.mxu0  ;;  %18 = vst [vmem:[#allocation2] sm:$0x1] %v17_v23 }
0x1685   :  { %3230 = vtanh.f32 %v2276_v1 }
0x1686   :  { %v3077_v14 = vpop.f32.mrf.mxu1  ;;  %v2381_v53 = vpop.f32.mrf.mxu0 }
0x1688   :  { %v3101_v15 = vpop.f32.mrf.mxu0 }
0x1689   :  { %v2338_v18 = vpop.f32.mrf.mxu1 }
0x168a   :  { %v2379_v56 = vadd.f32 %v2378_v10, %v2338_v18 }
0x168b   :  { %v3092_v12 = vpop.f32.mrf.mxu1  ;;  %v2663_v11 = vld [vmem:[#allocation2] ss:$0 sm:$0xff] }
0x168c   :  { %v2384_v51 = vadd.f32 %v3872_v16, %v2379_v56 }
0x168d   :  { %v2341_v19 = vpop.f32.mrf.mxu1 }
0x168e   :  { %3232 = vtanh.f32 %v2384_v51 }
0x168f   :  { %v3093_v57 = vpop.f32.mrf.mxu1 }
0x1692   :  { %v3231_v21 = vpop.eup %3230 }
0x1693   :  { %2282 = vrot.lane.b32.xlu0 %v3231_v21, %s3258_s29  ;;  %v2278_v55 = vadd.f32 1.0, %v3231_v21 }
0x1695   :  { %v2279_v8 = vmul.f32 0.5, %v2278_v55 }
0x1697   :  { %v2280_v7 = vmul.f32 %v2279_v8, %v3883_v44 }
0x169b   :  { %v3233_v22 = vpop.eup %3232 }
0x169c   :  { %2390 = vrot.lane.b32.xlu1 %v3233_v22, %s3258_s29  ;;  %v2386_v5 = vadd.f32 1.0, %v3233_v22 }
0x169e   :  { %v2387_v26 = vmul.f32 0.5, %v2386_v5 }
0x16a0   :  { %v2388_v13 = vmul.f32 %v2387_v26, %v3887_v47 }
0x1705   :  { %v2283_v36 = vpop.permute.xlu0 %2282 }
0x1706   :  { %v2285_v24 = vmul.f32 %v2283_v36, %v2279_v8 }
0x1708   :  { %2287 = vrot.lane.b32.xlu0 %v2285_v24, %s3259_s3 }
0x170e   :  { %v2391_v30 = vpop.permute.xlu1 %2390 }
0x170f   :  { %v2393_v34 = vmul.f32 %v2391_v30, %v2387_v26 }
0x1711   :  { %2395 = vrot.lane.b32.xlu1 %v2393_v34, %s3259_s3 }
0x177a   :  { %v2288_v32 = vpop.permute.xlu0 %2287 }
0x177b   :  { %v2290_v37 = vadd.f32 %v2288_v32, %v2280_v7 }
0x177d   :  { %3234 = vtanh.f32 %v2290_v37 }
0x1783   :  { %v2396_v17 = vpop.permute.xlu1 %2395 }
0x1784   :  { %v2398_v42 = vadd.f32 %v2396_v17, %v2388_v13 }
0x1786   :  { %3236 = vtanh.f32 %v2398_v42 }
0x178a   :  { %v3235_v20 = vpop.eup %3234 }
0x178b   :  { %2293 = vrot.lane.b32.xlu0 %v3235_v20, %s3258_s29 }
0x1793   :  { %v3237_v25 = vpop.eup %3236 }
0x1794   :  { %2401 = vrot.lane.b32.xlu1 %v3237_v25, %s3258_s29 }
0x17fd   :  { %v2294_v29 = vpop.permute.xlu0 %2293 }
0x17fe   :  { %v2296_v38 = vmul.f32 %v2294_v29, %v2279_v8 }
0x1800   :  { %v2297_v2 = vpack.c.bf16 %v2296_v38, %v2296_v38 }
0x1802   :  { %2453 = vrot.lane.b32.xlu1 %v2297_v2, %s3259_s3 }
0x1806   :  { %v2402_v43 = vpop.permute.xlu1 %2401 }
0x1807   :  { %v2404_v44 = vmul.f32 %v2402_v43, %v2387_v26 }
0x1809   :  { %v2405_v45 = vpack.c.bf16 %v2404_v44, %v2404_v44 }
0x180b   :  { %2407 = vrot.lane.b32.xlu0 %v2405_v45, %s3259_s3 }
0x1874   :  { %v2454_v46 = vpop.permute.xlu1 %2453 }
0x1875   :  { %3115 = vmatmul.mubr.msk.bf16.vlgmr.msra.gmra.mxu0 %vm145_vm4, %v2454_v46 }
0x187d   :  { %v2408_v31 = vpop.permute.xlu0 %2407 }
0x187e   :  { %3107 = vmatmul.mubr.msk.bf16.vlgmr.msra.gmra.mxu1 %vm145_vm4, %v2408_v31 }
0x187f   :  { %3126 = vmatprep.mubr.msk.f32.mxu1 %vm3256_vm2, %v3254_v0 }
0x1935   :  { %v2492_v47 = vpop.f32.mrf.mxu0 }
0x1937   :  { %v3116_v33 = vpop.f32.mrf.mxu0 }
0x1939   :  { %v2495_v50 = vpop.f32.mrf.mxu0 }
0x193b   :  { %v3117_v48 = vpop.f32.mrf.mxu0 }
0x193e   :  { %v2446_v58 = vpop.f32.mrf.mxu1 }
0x193f   :  { %v2493_v27 = vadd.f32 %v2492_v47, %v2446_v58 }
0x1940   :  { %v3108_v9 = vpop.f32.mrf.mxu1 }
0x1941   :  { %v2498_v39 = vadd.f32 %v3872_v16, %v2493_v27  ;;  %v2522_v16 = vld [vmem:[%s3976_s10 + $0x18] sm:$0xff] }
0x1942   :  { %v2449_v59 = vpop.f32.mrf.mxu1  ;;  %3119 = vmatpush3.msra.mxu1 %v2522_v16 }
0x1943   :  { %3238 = vtanh.f32 %v2498_v39  ;;  %3120 = vmatprep.subr.mxu1 %v3254_v0 }
0x1944   :  { %v3109_v49 = vpop.f32.mrf.mxu1  ;;  %3121 = vmatpush3.msra.mxu1 %v2521_v28 }
0x1945   :  { %3122 = vmatprep.subr.mxu1 %v3254_v0 }
0x1946   :  { %3123 = vmatpush3.msra.mxu1 %v2520_v4 }
0x1947   :  { %3124 = vmatprep.subr.mxu1 %v3254_v0 }
0x1948   :  { %3125 = vmatpush3.msra.mxu1 %v2519_v6 }
0x1950   :  { %v3239_v60 = vpop.eup %3238 }
0x1951   :  { %2504 = vrot.lane.b32.xlu0 %v3239_v60, %s3258_s29  ;;  %v2500_v40 = vadd.f32 1.0, %v3239_v60 }
0x1953   :  { %v2501_v61 = vmul.f32 0.5, %v2500_v40 }
0x1955   :  { %v2502_v63 = vmul.f32 %v2501_v61, %v2398_v42 }
0x19c3   :  { %v2505_v35 = vpop.permute.xlu0 %2504 }
0x19c4   :  { %v2507_v62 = vmul.f32 %v2505_v35, %v2501_v61 }
0x19c6   :  { %2509 = vrot.lane.b32.xlu1 %v2507_v62, %s3259_s3 }
0x1a38   :  { %v2510_v54 = vpop.permute.xlu1 %2509 }
0x1a39   :  { %v2512_v3 = vadd.f32 %v2510_v54, %v2502_v63 }
0x1a3b   :  { %3240 = vtanh.f32 %v2512_v3 }
0x1a48   :  { %v3241_v41 = vpop.eup %3240 }
0x1a49   :  { %2515 = vrot.lane.b32.xlu0 %v3241_v41, %s3258_s29 }
0x1abb   :  { %v2516_v10 = vpop.permute.xlu0 %2515 }
0x1abc   :  { %v2518_v1 = vmul.f32 %v2516_v10, %v2501_v61 }
0x1abe   :  { %2531 = vrot.lane.b32.xlu1 %v2518_v1, %s3259_s3 }
0x1b30   :  { %v2532_v52 = vpop.permute.xlu1 %2531 }
0x1b31   :  { %3127 = vmatmul.mubr.msk.f32.vlgmr.msra.gmra.mxu1 %vm145_vm4, %v2532_v52 }
0x1bf1   :  { %v2601_v14 = vpop.f32.mrf.mxu1 }
0x1bf2   :  { %v2602_v0 = vadd.f32 %v2663_v11, %v2601_v14 }
0x1bf3   :  { %v3128_v53 = vpop.f32.mrf.mxu1 }
0x1bf4   :  { %2606 = vst.msk [vmem:[%s3978_s12] sm:$0x3] %vm2605_vm5, %v2602_v0 }

</bundles_post_ra>
